<compile_context>
chip_gen: v5e
topology: v5e:2x2
jax: 0.10.0
libtpu: 0.0.40
codegen_flags: <defaults>
</compile_context>

<pallas_src>
import numpy as np
import jax
import jax.numpy as jnp
from jax import lax
from jax.experimental import pallas as pl
from jax.experimental.pallas import tpu as pltpu


def _viterbi_kernel(h_ref, w_ref, b_ref, trans_ref, trans_t_ref,
                    probs_ref, path_ref):
    # h_ref: (Bb*S, H)   w_ref: (C, H)   b_ref: (1, C)
    # trans_ref / trans_t_ref: (C, C)  (transition and its transpose)
    # probs_ref: (Bb, S, C) f32     path_ref: (Bb, 1, S) i32
    Bb, S, C = probs_ref.shape

    w = w_ref[...]                                   # (C, H)
    bias_row = b_ref[...]                            # (1, C)
    trans = trans_ref[...]                           # (C, C)
    trans_t = trans_t_ref[...]                       # (C, C) == trans.T (exact)

    # Emission scores for every (item, step) position of the block in ONE MXU
    # matmul (stand-in for the BERT MLM logits sliced to the label tokens).
    emis = lax.dot_general(h_ref[...], w, (((1,), (1,)), ((), ())),
                           precision=lax.Precision.HIGHEST,
                           preferred_element_type=jnp.float32) + bias_row   # (Bb*S, C)

    # Hoisted constants (never re-materialized inside the loops).
    row_iota = lax.broadcasted_iota(jnp.int32, (C, C), 0)
    col_iota = lax.broadcasted_iota(jnp.int32, (C, C), 1)
    eye = (row_iota == col_iota).astype(jnp.float32)
    lane_c = lax.broadcasted_iota(jnp.int32, (1, C), 1)       # class lane index
    lane_s = lax.broadcasted_iota(jnp.int32, (1, S), 1)       # seq lane index
    sub_bs = lax.broadcasted_iota(jnp.int32, (Bb * S, C), 0)  # block-row sublane index

    trills_blk = None                                          # (Bb*S, C) slab

    for b_idx in range(Bb):                                    # static in-kernel batch loop
        base = b_idx * S

        # Per-step observation rows (1, C) and their exact column forms (C, 1).
        # The column conversion (select + lane-reduce) is hoisted out of the
        # serial recurrence; it is exact (select 1 element, add zeros).
        obs_rows = [emis[base + t: base + t + 1, :] for t in range(S)]
        obs_cols = [jnp.sum(jnp.broadcast_to(r, (C, C)) * eye,
                            axis=1, keepdims=True) for r in obs_rows]

        # ---- step 0: scores = logit; trills row 0 = logit
        prev_row = obs_rows[0]                                 # (1, C)
        prev_col = obs_cols[0]                                 # (C, 1) == prev_row.T
        trill_rows = [prev_row]
        bp_rows = [None]                                       # back-pointers, t>=1 only

        # ---- steps 1..S-1, fully unrolled: VPU adds + XLU max reduces only.
        # M and Mt are exact transposes of each other (same float op order), so
        # the row/column carried forms stay bitwise consistent.
        for t in range(1, S):
            M = prev_col + trans + obs_rows[t]                 # (C, C)
            Mt = prev_row + trans_t + obs_cols[t]              # (C, C) == M.T
            new_row = jnp.max(M, axis=0, keepdims=True)        # (1, C)  sublane reduce
            new_col = jnp.max(Mt, axis=1, keepdims=True)       # (C, 1)  lane reduce
            # first-argmax along axis 0 (matches torch/np tie-breaking)
            idxs = jnp.min(jnp.where(M == new_row, row_iota, C),
                           axis=0, keepdims=True)              # (1, C) int32
            trill_rows.append(new_row)
            bp_rows.append(idxs)
            prev_row, prev_col = new_row, new_col

        # ---- best final class:  scores.argmax()  (first occurrence)
        max_v = jnp.max(prev_row)
        best = jnp.min(jnp.where(prev_row == max_v, lane_c, C))   # scalar int32

        # ---- backtrack through the int32 back-pointers.
        j = best
        path_row = jnp.where(lane_s == S - 1, j, jnp.zeros((1, S), jnp.int32))
        for t in range(S - 1, 0, -1):
            # j <- bp[t][j]  : extract lane `j` of the back-pointer row
            j = jnp.sum(jnp.where(lane_c == j, bp_rows[t], 0))
            path_row = jnp.where(lane_s == t - 1, j, path_row)

        path_ref[pl.ds(b_idx, 1), :, :] = path_row.reshape(1, 1, S)

        # ---- scatter this item's trill rows into the block-wide slab so the
        #      softmax runs once per grid step (single exp / reduce chain).
        for t in range(S):
            full = jnp.broadcast_to(trill_rows[t], (Bb * S, C))
            if trills_blk is None:
                trills_blk = full
            else:
                trills_blk = jnp.where(sub_bs == base + t, full, trills_blk)

    # ---- F.softmax(trills) over the class axis, batched over the whole block.
    mx = jnp.max(trills_blk, axis=1, keepdims=True)
    e = jnp.exp(trills_blk - mx)
    probs_blk = e / jnp.sum(e, axis=1, keepdims=True)            # (Bb*S, C)

    for b_idx in range(Bb):
        probs_ref[pl.ds(b_idx, 1), :, :] = (
            probs_blk[b_idx * S:(b_idx + 1) * S, :].reshape(1, S, C))


def sequence_labeling_forward(h, fc_w, fc_b, trans, *, block_b=None):
    """h: (B, S, H) mask-token hidden states; fc_w: (C, H); fc_b: (C,); trans: (C, C)."""
    B, S, H = h.shape
    C = trans.shape[0]

    if block_b is None:
        # Amortize per-grid-step overhead over several batch items, but keep
        # >= 2 grid steps when possible so the "parallel" batch axis can shard
        # across the two TensorCores on v7x.  The flattened emission input
        # block (block_b*S, H) must stay sublane-aligned (or cover the array).
        block_b = 1
        for cand in range(min(B, max(1, 128 // C)), 0, -1):
            if B % cand != 0:
                continue
            if (cand * S) % 8 != 0 and cand != B:
                continue
            if (B // cand) >= min(2, B):
                block_b = cand
                break
        if (block_b * S) % 8 != 0 and block_b != B:
            block_b = B
    assert B % block_b == 0, "block_b must divide the batch size"
    grid = (B // block_b,)

    h_flat = h.reshape(B * S, H)                  # lane-dense emission input slab

    probs, best_path = pl.pallas_call(
        _viterbi_kernel,
        out_shape=(jax.ShapeDtypeStruct((B, S, C), jnp.float32),
                   jax.ShapeDtypeStruct((B, 1, S), jnp.int32)),
        grid_spec=pltpu.PrefetchScalarGridSpec(
            num_scalar_prefetch=0,
            grid=grid,
            in_specs=[pl.BlockSpec((block_b * S, H), lambda g: (g, 0)),
                      pl.BlockSpec((C, H), lambda g: (0, 0)),
                      pl.BlockSpec((1, C), lambda g: (0, 0)),
                      pl.BlockSpec((C, C), lambda g: (0, 0)),
                      pl.BlockSpec((C, C), lambda g: (0, 0))],
            out_specs=[pl.BlockSpec((block_b, S, C), lambda g: (g, 0, 0)),
                       pl.BlockSpec((block_b, 1, S), lambda g: (g, 0, 0))],
        ),
        compiler_params=pltpu.CompilerParams(
            dimension_semantics=("parallel",)),
    )(h_flat, fc_w, fc_b.reshape(1, C), trans, jnp.transpose(trans))

    # TODO(synk): BERT masked-LM loss is not reproducible without the pretrained model.
    total_loss = jnp.float32(0.0)
    return probs, best_path[:, 0, :], total_loss


def _reference(h, w, b, trans):
    """Pure NumPy replica of viterbi_decode_v3 / forward semantics."""
    B, S, H = h.shape
    C = trans.shape[0]
    emis = h @ w.T + b
    probs_all, paths_all = [], []
    for bi in range(B):
        labels = np.arange(C).reshape(1, -1)
        scores = emis[bi, 0].reshape(-1, 1)
        trills = scores.reshape(1, -1)
        paths = labels
        for t in range(1, S):
            observe = emis[bi, t].reshape(1, -1)
            M = scores + trans + observe
            scores = M.max(axis=0).reshape(-1, 1)
            trills = np.concatenate([trills, scores.reshape(1, -1)], 0)
            idxs = M.argmax(axis=0)
            paths = np.concatenate([paths[:, idxs], labels], 0)
        best = paths[:, scores.argmax()]
        e = np.exp(trills - trills.max(axis=1, keepdims=True))
        probs_all.append(e / e.sum(axis=1, keepdims=True))
        paths_all.append(best)
    return np.stack(probs_all), np.stack(paths_all)


if __name__ == "__main__":
    B, S, H, C = 2, 8, 32, 8          # batch, seq_len, hidden_size, class_nums
    key = jax.random.PRNGKey(0)
    k1, k2, k3, k4 = jax.random.split(key, 4)
    h = jax.random.normal(k1, (B, S, H), jnp.float32)                      # mask hidden states
    fc_w = jax.random.normal(k2, (C, H), jnp.float32) / np.sqrt(H)         # nn.Linear(hidden, C).weight
    fc_b = jax.random.normal(k3, (C,), jnp.float32) * 0.1                  # nn.Linear bias
    trans = jax.random.normal(k4, (C, C), jnp.float32)                     # transition_params (randn)

    probs, best_path, loss = sequence_labeling_forward(h, fc_w, fc_b, trans)
    jax.block_until_ready((probs, best_path, loss))

    ref_probs, ref_paths = _reference(np.asarray(h), np.asarray(fc_w),
                                      np.asarray(fc_b), np.asarray(trans))
    assert np.allclose(np.asarray(probs), ref_probs, rtol=1e-4, atol=1e-4), "probs mismatch"
    assert np.array_equal(np.asarray(best_path), ref_paths), "best path mismatch"
    print("KERNEL_OK")
</pallas_src>

<mosaic_0001>
module attributes {stable_mosaic.version = 11 : i64} {
  func.func @_viterbi_kernel(%arg0: i32, %arg1: memref<8x32xf32, #tpu.memory_space<vmem>>, %arg2: memref<8x32xf32, #tpu.memory_space<vmem>>, %arg3: memref<1x8xf32, #tpu.memory_space<vmem>>, %arg4: memref<8x8xf32, #tpu.memory_space<vmem>>, %arg5: memref<8x8xf32, #tpu.memory_space<vmem>>, %arg6: memref<1x8x8xf32, #tpu.memory_space<vmem>>, %arg7: memref<1x1x8xi32, #tpu.memory_space<vmem>>) attributes {dimension_semantics = [#tpu.dimension_semantics<parallel>], iteration_bounds = array<i64: 2>, scalar_prefetch = 0 : i64, scratch_operands = 0 : i64, tpu.core_type = #tpu.core_type<tc>, window_params = [{transform_indices = @transform_0, window_bounds = array<i64: 8, 32>}, {pipeline_mode = #tpu.pipeline_mode<synchronous>, transform_indices = @transform_1, window_bounds = array<i64: 8, 32>}, {pipeline_mode = #tpu.pipeline_mode<synchronous>, transform_indices = @transform_2, window_bounds = array<i64: 1, 8>}, {pipeline_mode = #tpu.pipeline_mode<synchronous>, transform_indices = @transform_3, window_bounds = array<i64: 8, 8>}, {pipeline_mode = #tpu.pipeline_mode<synchronous>, transform_indices = @transform_4, window_bounds = array<i64: 8, 8>}, {transform_indices = @transform_5, window_bounds = array<i64: 1, 8, 8>}, {transform_indices = @transform_6, window_bounds = array<i64: 1, 1, 8>}]} {
    %c0 = arith.constant 0 : index
    %c0_0 = arith.constant 0 : index
    %0 = vector.load %arg2[%c0, %c0_0] : memref<8x32xf32, #tpu.memory_space<vmem>>, vector<8x32xf32>
    %c0_1 = arith.constant 0 : index
    %c0_2 = arith.constant 0 : index
    %1 = vector.load %arg3[%c0_1, %c0_2] : memref<1x8xf32, #tpu.memory_space<vmem>>, vector<1x8xf32>
    %c0_3 = arith.constant 0 : index
    %c0_4 = arith.constant 0 : index
    %2 = vector.load %arg4[%c0_3, %c0_4] : memref<8x8xf32, #tpu.memory_space<vmem>>, vector<8x8xf32>
    %c0_5 = arith.constant 0 : index
    %c0_6 = arith.constant 0 : index
    %3 = vector.load %arg5[%c0_5, %c0_6] : memref<8x8xf32, #tpu.memory_space<vmem>>, vector<8x8xf32>
    %c0_7 = arith.constant 0 : index
    %c0_8 = arith.constant 0 : index
    %4 = vector.load %arg1[%c0_7, %c0_8] : memref<8x32xf32, #tpu.memory_space<vmem>>, vector<8x32xf32>
    %cst = arith.constant dense<0.000000e+00> : vector<8x8xf32>
    %5 = tpu.matmul %4, %0, %cst {dimension_numbers = #tpu.dot_dimension_numbers<[1], [1], [0], [0], [0, 0, 1, 0], [], []>, precision = #tpu.contract_precision<fp32>} : vector<8x32xf32>, vector<8x32xf32>, vector<8x8xf32> -> vector<8x8xf32>
    %6 = vector.broadcast %1 : vector<1x8xf32> to vector<8x8xf32>
    %7 = arith.addf %5, %6 : vector<8x8xf32>
    %8 = tpu.iota {dimensions = array<i32: 0>} : vector<8x8xi32>
    %9 = tpu.iota {dimensions = array<i32: 1>} : vector<8x8xi32>
    %10 = arith.cmpi eq, %8, %9 : vector<8x8xi32>
    %11 = arith.extui %10 : vector<8x8xi1> to vector<8x8xi32>
    %12 = arith.sitofp %11 : vector<8x8xi32> to vector<8x8xf32>
    %13 = tpu.iota {dimensions = array<i32: 1>} : vector<1x8xi32>
    %14 = tpu.iota {dimensions = array<i32: 1>} : vector<1x8xi32>
    %15 = tpu.iota {dimensions = array<i32: 0>} : vector<8x8xi32>
    %16 = vector.extract_strided_slice %7 {offsets = [0, 0], sizes = [1, 8], strides = [1, 1]} : vector<8x8xf32> to vector<1x8xf32>
    %17 = vector.extract_strided_slice %7 {offsets = [1, 0], sizes = [1, 8], strides = [1, 1]} : vector<8x8xf32> to vector<1x8xf32>
    %18 = vector.extract_strided_slice %7 {offsets = [2, 0], sizes = [1, 8], strides = [1, 1]} : vector<8x8xf32> to vector<1x8xf32>
    %19 = vector.extract_strided_slice %7 {offsets = [3, 0], sizes = [1, 8], strides = [1, 1]} : vector<8x8xf32> to vector<1x8xf32>
    %20 = vector.extract_strided_slice %7 {offsets = [4, 0], sizes = [1, 8], strides = [1, 1]} : vector<8x8xf32> to vector<1x8xf32>
    %21 = vector.extract_strided_slice %7 {offsets = [5, 0], sizes = [1, 8], strides = [1, 1]} : vector<8x8xf32> to vector<1x8xf32>
    %22 = vector.extract_strided_slice %7 {offsets = [6, 0], sizes = [1, 8], strides = [1, 1]} : vector<8x8xf32> to vector<1x8xf32>
    %23 = vector.extract_strided_slice %7 {offsets = [7, 0], sizes = [1, 8], strides = [1, 1]} : vector<8x8xf32> to vector<1x8xf32>
    %24 = vector.shape_cast %16 : vector<1x8xf32> to vector<1x8xf32>
    %25 = vector.broadcast %24 : vector<1x8xf32> to vector<8x8xf32>
    %26 = arith.mulf %25, %12 : vector<8x8xf32>
    %cst_9 = arith.constant dense<0.000000e+00> : vector<8xf32>
    %27 = vector.multi_reduction <add>, %26, %cst_9 [1] : vector<8x8xf32> to vector<8xf32>
    %28 = vector.shape_cast %27 : vector<8xf32> to vector<8x1xf32>
    %29 = vector.shape_cast %17 : vector<1x8xf32> to vector<1x8xf32>
    %30 = vector.broadcast %29 : vector<1x8xf32> to vector<8x8xf32>
    %31 = arith.mulf %30, %12 : vector<8x8xf32>
    %cst_10 = arith.constant dense<0.000000e+00> : vector<8xf32>
    %32 = vector.multi_reduction <add>, %31, %cst_10 [1] : vector<8x8xf32> to vector<8xf32>
    %33 = vector.shape_cast %32 : vector<8xf32> to vector<8x1xf32>
    %34 = vector.shape_cast %18 : vector<1x8xf32> to vector<1x8xf32>
    %35 = vector.broadcast %34 : vector<1x8xf32> to vector<8x8xf32>
    %36 = arith.mulf %35, %12 : vector<8x8xf32>
    %cst_11 = arith.constant dense<0.000000e+00> : vector<8xf32>
    %37 = vector.multi_reduction <add>, %36, %cst_11 [1] : vector<8x8xf32> to vector<8xf32>
    %38 = vector.shape_cast %37 : vector<8xf32> to vector<8x1xf32>
    %39 = vector.shape_cast %19 : vector<1x8xf32> to vector<1x8xf32>
    %40 = vector.broadcast %39 : vector<1x8xf32> to vector<8x8xf32>
    %41 = arith.mulf %40, %12 : vector<8x8xf32>
    %cst_12 = arith.constant dense<0.000000e+00> : vector<8xf32>
    %42 = vector.multi_reduction <add>, %41, %cst_12 [1] : vector<8x8xf32> to vector<8xf32>
    %43 = vector.shape_cast %42 : vector<8xf32> to vector<8x1xf32>
    %44 = vector.shape_cast %20 : vector<1x8xf32> to vector<1x8xf32>
    %45 = vector.broadcast %44 : vector<1x8xf32> to vector<8x8xf32>
    %46 = arith.mulf %45, %12 : vector<8x8xf32>
    %cst_13 = arith.constant dense<0.000000e+00> : vector<8xf32>
    %47 = vector.multi_reduction <add>, %46, %cst_13 [1] : vector<8x8xf32> to vector<8xf32>
    %48 = vector.shape_cast %47 : vector<8xf32> to vector<8x1xf32>
    %49 = vector.shape_cast %21 : vector<1x8xf32> to vector<1x8xf32>
    %50 = vector.broadcast %49 : vector<1x8xf32> to vector<8x8xf32>
    %51 = arith.mulf %50, %12 : vector<8x8xf32>
    %cst_14 = arith.constant dense<0.000000e+00> : vector<8xf32>
    %52 = vector.multi_reduction <add>, %51, %cst_14 [1] : vector<8x8xf32> to vector<8xf32>
    %53 = vector.shape_cast %52 : vector<8xf32> to vector<8x1xf32>
    %54 = vector.shape_cast %22 : vector<1x8xf32> to vector<1x8xf32>
    %55 = vector.broadcast %54 : vector<1x8xf32> to vector<8x8xf32>
    %56 = arith.mulf %55, %12 : vector<8x8xf32>
    %cst_15 = arith.constant dense<0.000000e+00> : vector<8xf32>
    %57 = vector.multi_reduction <add>, %56, %cst_15 [1] : vector<8x8xf32> to vector<8xf32>
    %58 = vector.shape_cast %57 : vector<8xf32> to vector<8x1xf32>
    %59 = vector.broadcast %28 : vector<8x1xf32> to vector<8x8xf32>
    %60 = arith.addf %59, %2 : vector<8x8xf32>
    %61 = vector.broadcast %17 : vector<1x8xf32> to vector<8x8xf32>
    %62 = arith.addf %60, %61 : vector<8x8xf32>
    %63 = vector.broadcast %16 : vector<1x8xf32> to vector<8x8xf32>
    %64 = arith.addf %63, %3 : vector<8x8xf32>
    %65 = vector.broadcast %33 : vector<8x1xf32> to vector<8x8xf32>
    %66 = arith.addf %64, %65 : vector<8x8xf32>
    %cst_16 = arith.constant dense<0xFF800000> : vector<8xf32>
    %67 = vector.multi_reduction <maximumf>, %62, %cst_16 [0] : vector<8x8xf32> to vector<8xf32>
    %68 = vector.shape_cast %67 : vector<8xf32> to vector<1x8xf32>
    %cst_17 = arith.constant dense<0xFF800000> : vector<8xf32>
    %69 = vector.multi_reduction <maximumf>, %66, %cst_17 [1] : vector<8x8xf32> to vector<8xf32>
    %70 = vector.shape_cast %69 : vector<8xf32> to vector<8x1xf32>
    %71 = vector.broadcast %68 : vector<1x8xf32> to vector<8x8xf32>
    %72 = arith.cmpf oeq, %62, %71 : vector<8x8xf32>
    %c8_i32 = arith.constant 8 : i32
    %73 = vector.broadcast %c8_i32 : i32 to vector<8x8xi32>
    %74 = arith.select %72, %8, %73 : vector<8x8xi1>, vector<8x8xi32>
    %cst_18 = arith.constant dense<2147483647> : vector<8xi32>
    %75 = vector.multi_reduction <minsi>, %74, %cst_18 [0] : vector<8x8xi32> to vector<8xi32>
    %76 = vector.shape_cast %75 : vector<8xi32> to vector<1x8xi32>
    %77 = vector.broadcast %70 : vector<8x1xf32> to vector<8x8xf32>
    %78 = arith.addf %77, %2 : vector<8x8xf32>
    %79 = vector.broadcast %18 : vector<1x8xf32> to vector<8x8xf32>
    %80 = arith.addf %78, %79 : vector<8x8xf32>
    %81 = vector.broadcast %68 : vector<1x8xf32> to vector<8x8xf32>
    %82 = arith.addf %81, %3 : vector<8x8xf32>
    %83 = vector.broadcast %38 : vector<8x1xf32> to vector<8x8xf32>
    %84 = arith.addf %82, %83 : vector<8x8xf32>
    %cst_19 = arith.constant dense<0xFF800000> : vector<8xf32>
    %85 = vector.multi_reduction <maximumf>, %80, %cst_19 [0] : vector<8x8xf32> to vector<8xf32>
    %86 = vector.shape_cast %85 : vector<8xf32> to vector<1x8xf32>
    %cst_20 = arith.constant dense<0xFF800000> : vector<8xf32>
    %87 = vector.multi_reduction <maximumf>, %84, %cst_20 [1] : vector<8x8xf32> to vector<8xf32>
    %88 = vector.shape_cast %87 : vector<8xf32> to vector<8x1xf32>
    %89 = vector.broadcast %86 : vector<1x8xf32> to vector<8x8xf32>
    %90 = arith.cmpf oeq, %80, %89 : vector<8x8xf32>
    %c8_i32_21 = arith.constant 8 : i32
    %91 = vector.broadcast %c8_i32_21 : i32 to vector<8x8xi32>
    %92 = arith.select %90, %8, %91 : vector<8x8xi1>, vector<8x8xi32>
    %cst_22 = arith.constant dense<2147483647> : vector<8xi32>
    %93 = vector.multi_reduction <minsi>, %92, %cst_22 [0] : vector<8x8xi32> to vector<8xi32>
    %94 = vector.shape_cast %93 : vector<8xi32> to vector<1x8xi32>
    %95 = vector.broadcast %88 : vector<8x1xf32> to vector<8x8xf32>
    %96 = arith.addf %95, %2 : vector<8x8xf32>
    %97 = vector.broadcast %19 : vector<1x8xf32> to vector<8x8xf32>
    %98 = arith.addf %96, %97 : vector<8x8xf32>
    %99 = vector.broadcast %86 : vector<1x8xf32> to vector<8x8xf32>
    %100 = arith.addf %99, %3 : vector<8x8xf32>
    %101 = vector.broadcast %43 : vector<8x1xf32> to vector<8x8xf32>
    %102 = arith.addf %100, %101 : vector<8x8xf32>
    %cst_23 = arith.constant dense<0xFF800000> : vector<8xf32>
    %103 = vector.multi_reduction <maximumf>, %98, %cst_23 [0] : vector<8x8xf32> to vector<8xf32>
    %104 = vector.shape_cast %103 : vector<8xf32> to vector<1x8xf32>
    %cst_24 = arith.constant dense<0xFF800000> : vector<8xf32>
    %105 = vector.multi_reduction <maximumf>, %102, %cst_24 [1] : vector<8x8xf32> to vector<8xf32>
    %106 = vector.shape_cast %105 : vector<8xf32> to vector<8x1xf32>
    %107 = vector.broadcast %104 : vector<1x8xf32> to vector<8x8xf32>
    %108 = arith.cmpf oeq, %98, %107 : vector<8x8xf32>
    %c8_i32_25 = arith.constant 8 : i32
    %109 = vector.broadcast %c8_i32_25 : i32 to vector<8x8xi32>
    %110 = arith.select %108, %8, %109 : vector<8x8xi1>, vector<8x8xi32>
    %cst_26 = arith.constant dense<2147483647> : vector<8xi32>
    %111 = vector.multi_reduction <minsi>, %110, %cst_26 [0] : vector<8x8xi32> to vector<8xi32>
    %112 = vector.shape_cast %111 : vector<8xi32> to vector<1x8xi32>
    %113 = vector.broadcast %106 : vector<8x1xf32> to vector<8x8xf32>
    %114 = arith.addf %113, %2 : vector<8x8xf32>
    %115 = vector.broadcast %20 : vector<1x8xf32> to vector<8x8xf32>
    %116 = arith.addf %114, %115 : vector<8x8xf32>
    %117 = vector.broadcast %104 : vector<1x8xf32> to vector<8x8xf32>
    %118 = arith.addf %117, %3 : vector<8x8xf32>
    %119 = vector.broadcast %48 : vector<8x1xf32> to vector<8x8xf32>
    %120 = arith.addf %118, %119 : vector<8x8xf32>
    %cst_27 = arith.constant dense<0xFF800000> : vector<8xf32>
    %121 = vector.multi_reduction <maximumf>, %116, %cst_27 [0] : vector<8x8xf32> to vector<8xf32>
    %122 = vector.shape_cast %121 : vector<8xf32> to vector<1x8xf32>
    %cst_28 = arith.constant dense<0xFF800000> : vector<8xf32>
    %123 = vector.multi_reduction <maximumf>, %120, %cst_28 [1] : vector<8x8xf32> to vector<8xf32>
    %124 = vector.shape_cast %123 : vector<8xf32> to vector<8x1xf32>
    %125 = vector.broadcast %122 : vector<1x8xf32> to vector<8x8xf32>
    %126 = arith.cmpf oeq, %116, %125 : vector<8x8xf32>
    %c8_i32_29 = arith.constant 8 : i32
    %127 = vector.broadcast %c8_i32_29 : i32 to vector<8x8xi32>
    %128 = arith.select %126, %8, %127 : vector<8x8xi1>, vector<8x8xi32>
    %cst_30 = arith.constant dense<2147483647> : vector<8xi32>
    %129 = vector.multi_reduction <minsi>, %128, %cst_30 [0] : vector<8x8xi32> to vector<8xi32>
    %130 = vector.shape_cast %129 : vector<8xi32> to vector<1x8xi32>
    %131 = vector.broadcast %124 : vector<8x1xf32> to vector<8x8xf32>
    %132 = arith.addf %131, %2 : vector<8x8xf32>
    %133 = vector.broadcast %21 : vector<1x8xf32> to vector<8x8xf32>
    %134 = arith.addf %132, %133 : vector<8x8xf32>
    %135 = vector.broadcast %122 : vector<1x8xf32> to vector<8x8xf32>
    %136 = arith.addf %135, %3 : vector<8x8xf32>
    %137 = vector.broadcast %53 : vector<8x1xf32> to vector<8x8xf32>
    %138 = arith.addf %136, %137 : vector<8x8xf32>
    %cst_31 = arith.constant dense<0xFF800000> : vector<8xf32>
    %139 = vector.multi_reduction <maximumf>, %134, %cst_31 [0] : vector<8x8xf32> to vector<8xf32>
    %140 = vector.shape_cast %139 : vector<8xf32> to vector<1x8xf32>
    %cst_32 = arith.constant dense<0xFF800000> : vector<8xf32>
    %141 = vector.multi_reduction <maximumf>, %138, %cst_32 [1] : vector<8x8xf32> to vector<8xf32>
    %142 = vector.shape_cast %141 : vector<8xf32> to vector<8x1xf32>
    %143 = vector.broadcast %140 : vector<1x8xf32> to vector<8x8xf32>
    %144 = arith.cmpf oeq, %134, %143 : vector<8x8xf32>
    %c8_i32_33 = arith.constant 8 : i32
    %145 = vector.broadcast %c8_i32_33 : i32 to vector<8x8xi32>
    %146 = arith.select %144, %8, %145 : vector<8x8xi1>, vector<8x8xi32>
    %cst_34 = arith.constant dense<2147483647> : vector<8xi32>
    %147 = vector.multi_reduction <minsi>, %146, %cst_34 [0] : vector<8x8xi32> to vector<8xi32>
    %148 = vector.shape_cast %147 : vector<8xi32> to vector<1x8xi32>
    %149 = vector.broadcast %142 : vector<8x1xf32> to vector<8x8xf32>
    %150 = arith.addf %149, %2 : vector<8x8xf32>
    %151 = vector.broadcast %22 : vector<1x8xf32> to vector<8x8xf32>
    %152 = arith.addf %150, %151 : vector<8x8xf32>
    %153 = vector.broadcast %140 : vector<1x8xf32> to vector<8x8xf32>
    %154 = arith.addf %153, %3 : vector<8x8xf32>
    %155 = vector.broadcast %58 : vector<8x1xf32> to vector<8x8xf32>
    %156 = arith.addf %154, %155 : vector<8x8xf32>
    %cst_35 = arith.constant dense<0xFF800000> : vector<8xf32>
    %157 = vector.multi_reduction <maximumf>, %152, %cst_35 [0] : vector<8x8xf32> to vector<8xf32>
    %158 = vector.shape_cast %157 : vector<8xf32> to vector<1x8xf32>
    %cst_36 = arith.constant dense<0xFF800000> : vector<8xf32>
    %159 = vector.multi_reduction <maximumf>, %156, %cst_36 [1] : vector<8x8xf32> to vector<8xf32>
    %160 = vector.shape_cast %159 : vector<8xf32> to vector<8x1xf32>
    %161 = vector.broadcast %158 : vector<1x8xf32> to vector<8x8xf32>
    %162 = arith.cmpf oeq, %152, %161 : vector<8x8xf32>
    %c8_i32_37 = arith.constant 8 : i32
    %163 = vector.broadcast %c8_i32_37 : i32 to vector<8x8xi32>
    %164 = arith.select %162, %8, %163 : vector<8x8xi1>, vector<8x8xi32>
    %cst_38 = arith.constant dense<2147483647> : vector<8xi32>
    %165 = vector.multi_reduction <minsi>, %164, %cst_38 [0] : vector<8x8xi32> to vector<8xi32>
    %166 = vector.shape_cast %165 : vector<8xi32> to vector<1x8xi32>
    %167 = vector.broadcast %160 : vector<8x1xf32> to vector<8x8xf32>
    %168 = arith.addf %167, %2 : vector<8x8xf32>
    %169 = vector.broadcast %23 : vector<1x8xf32> to vector<8x8xf32>
    %170 = arith.addf %168, %169 : vector<8x8xf32>
    %cst_39 = arith.constant dense<0xFF800000> : vector<8xf32>
    %171 = vector.multi_reduction <maximumf>, %170, %cst_39 [0] : vector<8x8xf32> to vector<8xf32>
    %172 = vector.shape_cast %171 : vector<8xf32> to vector<1x8xf32>
    %173 = vector.broadcast %172 : vector<1x8xf32> to vector<8x8xf32>
    %174 = arith.cmpf oeq, %170, %173 : vector<8x8xf32>
    %c8_i32_40 = arith.constant 8 : i32
    %175 = vector.broadcast %c8_i32_40 : i32 to vector<8x8xi32>
    %176 = arith.select %174, %8, %175 : vector<8x8xi1>, vector<8x8xi32>
    %cst_41 = arith.constant dense<2147483647> : vector<8xi32>
    %177 = vector.multi_reduction <minsi>, %176, %cst_41 [0] : vector<8x8xi32> to vector<8xi32>
    %178 = vector.shape_cast %177 : vector<8xi32> to vector<1x8xi32>
    %179 = vector.shape_cast %172 : vector<1x8xf32> to vector<1x1x8xf32>
    %cst_42 = arith.constant dense<0xFF800000> : vector<1xf32>
    %180 = vector.multi_reduction <maximumf>, %179, %cst_42 [1, 2] : vector<1x1x8xf32> to vector<1xf32>
    %181 = vector.shape_cast %180 : vector<1xf32> to vector<1x1x1xf32>
    %182 = vector.extract %181[0, 0, 0] : f32 from vector<1x1x1xf32>
    %183 = vector.broadcast %182 : f32 to vector<1x8xf32>
    %184 = arith.cmpf oeq, %172, %183 : vector<1x8xf32>
    %c8_i32_43 = arith.constant 8 : i32
    %185 = vector.broadcast %c8_i32_43 : i32 to vector<1x8xi32>
    %186 = arith.select %184, %13, %185 : vector<1x8xi1>, vector<1x8xi32>
    %187 = vector.shape_cast %186 : vector<1x8xi32> to vector<1x1x8xi32>
    %cst_44 = arith.constant dense<2147483647> : vector<1xi32>
    %188 = vector.multi_reduction <minsi>, %187, %cst_44 [1, 2] : vector<1x1x8xi32> to vector<1xi32>
    %189 = vector.shape_cast %188 : vector<1xi32> to vector<1x1x1xi32>
    %190 = vector.extract %189[0, 0, 0] : i32 from vector<1x1x1xi32>
    %c7_i32 = arith.constant 7 : i32
    %191 = vector.broadcast %c7_i32 : i32 to vector<1x8xi32>
    %192 = arith.cmpi eq, %14, %191 : vector<1x8xi32>
    %c0_i32 = arith.constant 0 : i32
    %193 = vector.broadcast %c0_i32 : i32 to vector<1x8xi32>
    %194 = vector.broadcast %190 : i32 to vector<1x8xi32>
    %195 = arith.select %192, %194, %193 : vector<1x8xi1>, vector<1x8xi32>
    %196 = vector.broadcast %190 : i32 to vector<1x8xi32>
    %197 = arith.cmpi eq, %13, %196 : vector<1x8xi32>
    %c0_i32_45 = arith.constant 0 : i32
    %198 = vector.broadcast %c0_i32_45 : i32 to vector<1x8xi32>
    %199 = arith.select %197, %178, %198 : vector<1x8xi1>, vector<1x8xi32>
    %200 = vector.shape_cast %199 : vector<1x8xi32> to vector<1x1x8xi32>
    %cst_46 = arith.constant dense<0> : vector<1xi32>
    %201 = vector.multi_reduction <add>, %200, %cst_46 [1, 2] : vector<1x1x8xi32> to vector<1xi32>
    %202 = vector.shape_cast %201 : vector<1xi32> to vector<1x1x1xi32>
    %203 = vector.extract %202[0, 0, 0] : i32 from vector<1x1x1xi32>
    %c6_i32 = arith.constant 6 : i32
    %204 = vector.broadcast %c6_i32 : i32 to vector<1x8xi32>
    %205 = arith.cmpi eq, %14, %204 : vector<1x8xi32>
    %206 = vector.broadcast %203 : i32 to vector<1x8xi32>
    %207 = arith.select %205, %206, %195 : vector<1x8xi1>, vector<1x8xi32>
    %208 = vector.broadcast %203 : i32 to vector<1x8xi32>
    %209 = arith.cmpi eq, %13, %208 : vector<1x8xi32>
    %c0_i32_47 = arith.constant 0 : i32
    %210 = vector.broadcast %c0_i32_47 : i32 to vector<1x8xi32>
    %211 = arith.select %209, %166, %210 : vector<1x8xi1>, vector<1x8xi32>
    %212 = vector.shape_cast %211 : vector<1x8xi32> to vector<1x1x8xi32>
    %cst_48 = arith.constant dense<0> : vector<1xi32>
    %213 = vector.multi_reduction <add>, %212, %cst_48 [1, 2] : vector<1x1x8xi32> to vector<1xi32>
    %214 = vector.shape_cast %213 : vector<1xi32> to vector<1x1x1xi32>
    %215 = vector.extract %214[0, 0, 0] : i32 from vector<1x1x1xi32>
    %c5_i32 = arith.constant 5 : i32
    %216 = vector.broadcast %c5_i32 : i32 to vector<1x8xi32>
    %217 = arith.cmpi eq, %14, %216 : vector<1x8xi32>
    %218 = vector.broadcast %215 : i32 to vector<1x8xi32>
    %219 = arith.select %217, %218, %207 : vector<1x8xi1>, vector<1x8xi32>
    %220 = vector.broadcast %215 : i32 to vector<1x8xi32>
    %221 = arith.cmpi eq, %13, %220 : vector<1x8xi32>
    %c0_i32_49 = arith.constant 0 : i32
    %222 = vector.broadcast %c0_i32_49 : i32 to vector<1x8xi32>
    %223 = arith.select %221, %148, %222 : vector<1x8xi1>, vector<1x8xi32>
    %224 = vector.shape_cast %223 : vector<1x8xi32> to vector<1x1x8xi32>
    %cst_50 = arith.constant dense<0> : vector<1xi32>
    %225 = vector.multi_reduction <add>, %224, %cst_50 [1, 2] : vector<1x1x8xi32> to vector<1xi32>
    %226 = vector.shape_cast %225 : vector<1xi32> to vector<1x1x1xi32>
    %227 = vector.extract %226[0, 0, 0] : i32 from vector<1x1x1xi32>
    %c4_i32 = arith.constant 4 : i32
    %228 = vector.broadcast %c4_i32 : i32 to vector<1x8xi32>
    %229 = arith.cmpi eq, %14, %228 : vector<1x8xi32>
    %230 = vector.broadcast %227 : i32 to vector<1x8xi32>
    %231 = arith.select %229, %230, %219 : vector<1x8xi1>, vector<1x8xi32>
    %232 = vector.broadcast %227 : i32 to vector<1x8xi32>
    %233 = arith.cmpi eq, %13, %232 : vector<1x8xi32>
    %c0_i32_51 = arith.constant 0 : i32
    %234 = vector.broadcast %c0_i32_51 : i32 to vector<1x8xi32>
    %235 = arith.select %233, %130, %234 : vector<1x8xi1>, vector<1x8xi32>
    %236 = vector.shape_cast %235 : vector<1x8xi32> to vector<1x1x8xi32>
    %cst_52 = arith.constant dense<0> : vector<1xi32>
    %237 = vector.multi_reduction <add>, %236, %cst_52 [1, 2] : vector<1x1x8xi32> to vector<1xi32>
    %238 = vector.shape_cast %237 : vector<1xi32> to vector<1x1x1xi32>
    %239 = vector.extract %238[0, 0, 0] : i32 from vector<1x1x1xi32>
    %c3_i32 = arith.constant 3 : i32
    %240 = vector.broadcast %c3_i32 : i32 to vector<1x8xi32>
    %241 = arith.cmpi eq, %14, %240 : vector<1x8xi32>
    %242 = vector.broadcast %239 : i32 to vector<1x8xi32>
    %243 = arith.select %241, %242, %231 : vector<1x8xi1>, vector<1x8xi32>
    %244 = vector.broadcast %239 : i32 to vector<1x8xi32>
    %245 = arith.cmpi eq, %13, %244 : vector<1x8xi32>
    %c0_i32_53 = arith.constant 0 : i32
    %246 = vector.broadcast %c0_i32_53 : i32 to vector<1x8xi32>
    %247 = arith.select %245, %112, %246 : vector<1x8xi1>, vector<1x8xi32>
    %248 = vector.shape_cast %247 : vector<1x8xi32> to vector<1x1x8xi32>
    %cst_54 = arith.constant dense<0> : vector<1xi32>
    %249 = vector.multi_reduction <add>, %248, %cst_54 [1, 2] : vector<1x1x8xi32> to vector<1xi32>
    %250 = vector.shape_cast %249 : vector<1xi32> to vector<1x1x1xi32>
    %251 = vector.extract %250[0, 0, 0] : i32 from vector<1x1x1xi32>
    %c2_i32 = arith.constant 2 : i32
    %252 = vector.broadcast %c2_i32 : i32 to vector<1x8xi32>
    %253 = arith.cmpi eq, %14, %252 : vector<1x8xi32>
    %254 = vector.broadcast %251 : i32 to vector<1x8xi32>
    %255 = arith.select %253, %254, %243 : vector<1x8xi1>, vector<1x8xi32>
    %256 = vector.broadcast %251 : i32 to vector<1x8xi32>
    %257 = arith.cmpi eq, %13, %256 : vector<1x8xi32>
    %c0_i32_55 = arith.constant 0 : i32
    %258 = vector.broadcast %c0_i32_55 : i32 to vector<1x8xi32>
    %259 = arith.select %257, %94, %258 : vector<1x8xi1>, vector<1x8xi32>
    %260 = vector.shape_cast %259 : vector<1x8xi32> to vector<1x1x8xi32>
    %cst_56 = arith.constant dense<0> : vector<1xi32>
    %261 = vector.multi_reduction <add>, %260, %cst_56 [1, 2] : vector<1x1x8xi32> to vector<1xi32>
    %262 = vector.shape_cast %261 : vector<1xi32> to vector<1x1x1xi32>
    %263 = vector.extract %262[0, 0, 0] : i32 from vector<1x1x1xi32>
    %c1_i32 = arith.constant 1 : i32
    %264 = vector.broadcast %c1_i32 : i32 to vector<1x8xi32>
    %265 = arith.cmpi eq, %14, %264 : vector<1x8xi32>
    %266 = vector.broadcast %263 : i32 to vector<1x8xi32>
    %267 = arith.select %265, %266, %255 : vector<1x8xi1>, vector<1x8xi32>
    %268 = vector.broadcast %263 : i32 to vector<1x8xi32>
    %269 = arith.cmpi eq, %13, %268 : vector<1x8xi32>
    %c0_i32_57 = arith.constant 0 : i32
    %270 = vector.broadcast %c0_i32_57 : i32 to vector<1x8xi32>
    %271 = arith.select %269, %76, %270 : vector<1x8xi1>, vector<1x8xi32>
    %272 = vector.shape_cast %271 : vector<1x8xi32> to vector<1x1x8xi32>
    %cst_58 = arith.constant dense<0> : vector<1xi32>
    %273 = vector.multi_reduction <add>, %272, %cst_58 [1, 2] : vector<1x1x8xi32> to vector<1xi32>
    %274 = vector.shape_cast %273 : vector<1xi32> to vector<1x1x1xi32>
    %275 = vector.extract %274[0, 0, 0] : i32 from vector<1x1x1xi32>
    %c0_i32_59 = arith.constant 0 : i32
    %276 = vector.broadcast %c0_i32_59 : i32 to vector<1x8xi32>
    %277 = arith.cmpi eq, %14, %276 : vector<1x8xi32>
    %278 = vector.broadcast %275 : i32 to vector<1x8xi32>
    %279 = arith.select %277, %278, %267 : vector<1x8xi1>, vector<1x8xi32>
    %280 = vector.shape_cast %279 : vector<1x8xi32> to vector<1x1x8xi32>
    %c0_60 = arith.constant 0 : index
    %c0_61 = arith.constant 0 : index
    %c0_62 = arith.constant 0 : index
    %281 = vector.load %arg7[%c0_60, %c0_61, %c0_62] : memref<1x1x8xi32, #tpu.memory_space<vmem>>, vector<1x1x8xi32>
    tpu.vector_store %arg7[%c0_60, %c0_61, %c0_62], %280 {strides = array<i32>} : memref<1x1x8xi32, #tpu.memory_space<vmem>>, vector<1x1x8xi32>,
    %282 = vector.shape_cast %16 : vector<1x8xf32> to vector<1x8xf32>
    %283 = vector.broadcast %282 : vector<1x8xf32> to vector<8x8xf32>
    %284 = vector.shape_cast %68 : vector<1x8xf32> to vector<1x8xf32>
    %285 = vector.broadcast %284 : vector<1x8xf32> to vector<8x8xf32>
    %c1_i32_63 = arith.constant 1 : i32
    %286 = vector.broadcast %c1_i32_63 : i32 to vector<8x8xi32>
    %287 = arith.cmpi eq, %15, %286 : vector<8x8xi32>
    %288 = arith.select %287, %285, %283 : vector<8x8xi1>, vector<8x8xf32>
    %289 = vector.shape_cast %86 : vector<1x8xf32> to vector<1x8xf32>
    %290 = vector.broadcast %289 : vector<1x8xf32> to vector<8x8xf32>
    %c2_i32_64 = arith.constant 2 : i32
    %291 = vector.broadcast %c2_i32_64 : i32 to vector<8x8xi32>
    %292 = arith.cmpi eq, %15, %291 : vector<8x8xi32>
    %293 = arith.select %292, %290, %288 : vector<8x8xi1>, vector<8x8xf32>
    %294 = vector.shape_cast %104 : vector<1x8xf32> to vector<1x8xf32>
    %295 = vector.broadcast %294 : vector<1x8xf32> to vector<8x8xf32>
    %c3_i32_65 = arith.constant 3 : i32
    %296 = vector.broadcast %c3_i32_65 : i32 to vector<8x8xi32>
    %297 = arith.cmpi eq, %15, %296 : vector<8x8xi32>
    %298 = arith.select %297, %295, %293 : vector<8x8xi1>, vector<8x8xf32>
    %299 = vector.shape_cast %122 : vector<1x8xf32> to vector<1x8xf32>
    %300 = vector.broadcast %299 : vector<1x8xf32> to vector<8x8xf32>
    %c4_i32_66 = arith.constant 4 : i32
    %301 = vector.broadcast %c4_i32_66 : i32 to vector<8x8xi32>
    %302 = arith.cmpi eq, %15, %301 : vector<8x8xi32>
    %303 = arith.select %302, %300, %298 : vector<8x8xi1>, vector<8x8xf32>
    %304 = vector.shape_cast %140 : vector<1x8xf32> to vector<1x8xf32>
    %305 = vector.broadcast %304 : vector<1x8xf32> to vector<8x8xf32>
    %c5_i32_67 = arith.constant 5 : i32
    %306 = vector.broadcast %c5_i32_67 : i32 to vector<8x8xi32>
    %307 = arith.cmpi eq, %15, %306 : vector<8x8xi32>
    %308 = arith.select %307, %305, %303 : vector<8x8xi1>, vector<8x8xf32>
    %309 = vector.shape_cast %158 : vector<1x8xf32> to vector<1x8xf32>
    %310 = vector.broadcast %309 : vector<1x8xf32> to vector<8x8xf32>
    %c6_i32_68 = arith.constant 6 : i32
    %311 = vector.broadcast %c6_i32_68 : i32 to vector<8x8xi32>
    %312 = arith.cmpi eq, %15, %311 : vector<8x8xi32>
    %313 = arith.select %312, %310, %308 : vector<8x8xi1>, vector<8x8xf32>
    %314 = vector.shape_cast %172 : vector<1x8xf32> to vector<1x8xf32>
    %315 = vector.broadcast %314 : vector<1x8xf32> to vector<8x8xf32>
    %c7_i32_69 = arith.constant 7 : i32
    %316 = vector.broadcast %c7_i32_69 : i32 to vector<8x8xi32>
    %317 = arith.cmpi eq, %15, %316 : vector<8x8xi32>
    %318 = arith.select %317, %315, %313 : vector<8x8xi1>, vector<8x8xf32>
    %cst_70 = arith.constant dense<0xFF800000> : vector<8xf32>
    %319 = vector.multi_reduction <maximumf>, %318, %cst_70 [1] : vector<8x8xf32> to vector<8xf32>
    %320 = vector.shape_cast %319 : vector<8xf32> to vector<8x1xf32>
    %321 = vector.broadcast %320 : vector<8x1xf32> to vector<8x8xf32>
    %322 = arith.subf %318, %321 : vector<8x8xf32>
    %323 = math.exp %322 : vector<8x8xf32>
    %cst_71 = arith.constant dense<0.000000e+00> : vector<8xf32>
    %324 = vector.multi_reduction <add>, %323, %cst_71 [1] : vector<8x8xf32> to vector<8xf32>
    %325 = vector.shape_cast %324 : vector<8xf32> to vector<8x1xf32>
    %326 = vector.broadcast %325 : vector<8x1xf32> to vector<8x8xf32>
    %327 = arith.divf %323, %326 : vector<8x8xf32>
    %328 = vector.shape_cast %327 : vector<8x8xf32> to vector<1x8x8xf32>
    %c0_72 = arith.constant 0 : index
    %c0_73 = arith.constant 0 : index
    %c0_74 = arith.constant 0 : index
    %329 = vector.load %arg6[%c0_72, %c0_73, %c0_74] : memref<1x8x8xf32, #tpu.memory_space<vmem>>, vector<1x8x8xf32>
    tpu.vector_store %arg6[%c0_72, %c0_73, %c0_74], %328 {strides = array<i32>} : memref<1x8x8xf32, #tpu.memory_space<vmem>>, vector<1x8x8xf32>,
    return
  }
  func.func @transform_0(%arg0: i32) -> (i32, i32) {
    %c0_i32 = arith.constant 0 : i32
    %c0_i32_0 = arith.constant 0 : i32
    return %arg0, %c0_i32 : i32, i32
  }
  func.func @transform_1(%arg0: i32) -> (i32, i32) {
    %c0_i32 = arith.constant 0 : i32
    %c0_i32_0 = arith.constant 0 : i32
    %c0_i32_1 = arith.constant 0 : i32
    return %c0_i32, %c0_i32_0 : i32, i32
  }
  func.func @transform_2(%arg0: i32) -> (i32, i32) {
    %c0_i32 = arith.constant 0 : i32
    %c0_i32_0 = arith.constant 0 : i32
    %c0_i32_1 = arith.constant 0 : i32
    return %c0_i32, %c0_i32_0 : i32, i32
  }
  func.func @transform_3(%arg0: i32) -> (i32, i32) {
    %c0_i32 = arith.constant 0 : i32
    %c0_i32_0 = arith.constant 0 : i32
    %c0_i32_1 = arith.constant 0 : i32
    return %c0_i32, %c0_i32_0 : i32, i32
  }
  func.func @transform_4(%arg0: i32) -> (i32, i32) {
    %c0_i32 = arith.constant 0 : i32
    %c0_i32_0 = arith.constant 0 : i32
    %c0_i32_1 = arith.constant 0 : i32
    return %c0_i32, %c0_i32_0 : i32, i32
  }
  func.func @transform_5(%arg0: i32) -> (i32, i32, i32) {
    %c0_i32 = arith.constant 0 : i32
    %c0_i32_0 = arith.constant 0 : i32
    %c0_i32_1 = arith.constant 0 : i32
    return %arg0, %c0_i32, %c0_i32_0 : i32, i32, i32
  }
  func.func @transform_6(%arg0: i32) -> (i32, i32, i32) {
    %c0_i32 = arith.constant 0 : i32
    %c0_i32_0 = arith.constant 0 : i32
    %c0_i32_1 = arith.constant 0 : i32
    return %arg0, %c0_i32, %c0_i32_0 : i32, i32, i32
  }
}

</mosaic_0001>

<bundles_post_ra>
// kernel: tpu_custom_call.1
= control target key start
LH: loop header
LB: loop body
LE: loop exit
PB: predicated region body
PF: predicated region fallthrough
CT: control target
= control target key end

     0   :  { %s1826_s0 = inlined_call_operand.hbm [shape: f32[16,32], index: 0, kind: input, shape index: {}]   ;;  %s1827_s1 = inlined_call_operand.hbm [shape: f32[8,32], index: 1, kind: input, shape index: {}]   ;;  %s1828_s2 = inlined_call_operand.vmem [shape: f32[1,8], index: 2, kind: input, shape index: {}]   ;;  %s1829_s3 = inlined_call_operand.hbm [shape: f32[8,8], index: 3, kind: input, shape index: {}]   ;;  %s1830_s4 = inlined_call_operand.hbm [shape: f32[8,8], index: 4, kind: input, shape index: {}]   ;;  %s1831_s5 = inlined_call_operand.hbm [shape: f32[2,8,8], index: 5, kind: output, shape index: {0}]   ;;  %s1832_s6 = inlined_call_operand.hbm [shape: s32[2,1,8], index: 6, kind: output, shape index: {1}]  }
   0x1   :  { %1833 = sst [smem:[#allocation18_spill]] %s1826_s0 }
   0x2   :  { %12 = vsyncpa [#allocation3], 0 }
   0x3   :  { %14 = vsyncpa [#allocation3 + $0x1], 0 }
   0x4   :  { %15 = vsyncpa [#allocation6], 0 }
   0x5   :  { %16 = vsyncpa [#allocation9], 0 }
   0x6   :  { %17 = vsyncpa [#allocation4], 0 }
   0x7   :  { %19 = vsyncpa [#allocation4 + $0x1], 0 }
   0x8   :  { %20 = vsyncpa [#allocation12], 0 }
   0x9   :  { %22 = vsyncpa [#allocation12 + $0x1], 0  ;;  %s1457_s21 = smov 0   ;;  %s1459_s22 = smov 0  }
   0xa   :  { %s1461_s23 = smov 0   ;;  %s1463_s24 = smov 0  }
   0xb LB: > { %s1478_s25 = sadd.s32 4294967295, %s1416_s24   ;;  %s1065_s26 = sadd.s32 4294967294, %s1416_s24   ;;  %s1416_s24 = sphi %s1463_s24, %s1844_s24   ;;  %s1412_s23 = sphi %s1461_s23, %s1843_s23   ;;  %s1408_s22 = sphi %s1459_s22, %s1842_s22   ;;  %s1404_s21 = sphi %s1457_s21, %s1841_s21  }
   0xc   : > { %p48_p0 = scmp.ne.s32.totalorder %s1408_s22, %s1404_s21  ;;  %p49_p1 = scmp.eq.s32.totalorder %s1478_s25, 0 }
   0xd   : > { %p156_p2 = scmp.eq.s32.totalorder %s1478_s25, 1  ;;  %p162_p3 = scmp.eq.s32.totalorder %s1065_s26, 1 }
   0xe   : > { %p1487_p4 = por %p49_p1, %p48_p0  ;;  %p1066_p5 = scmp.ge.s32.totalorder %s1416_s24, 1 }
   0xf   : > { %p1492_p6 = por %p162_p3, %p48_p0  ;;  %p195_p7 = scmp.lt.s32.totalorder %s1416_s24, 3 }
  0x10   : > { %s207_s7 = sshll.u32 %s1827_s1, 4  ;;  %s1418_s9 = smov [#allocation5]   ;;  %s208_s7 = int_to_ptr.hbm [resolvable:$true] %s207_s7 }
  0x11   : > { %p1500_p8 = pnand %p1066_p5, %p195_p7  ;;  %s209_s10 = sshll.u32 %s1418_s9, 4  ;;  %s210_s10 = int_to_ptr.vmem [resolvable:$true] %s209_s10 }
  0x12   : > { %s222_s13 = sshll.u32 %s1829_s3, 4  ;;  %s234_s16 = sshll.u32 %s1830_s4, 4  ;;  %s223_s13 = int_to_ptr.hbm [resolvable:$true] %s222_s13  ;;  %s235_s16 = int_to_ptr.hbm [resolvable:$true] %s234_s16 }
  0x13   : > { %p1120_p10 = pneg %p1500_p8  ;;  %s1419_s17 = smov [#allocation7]  }
  0x14   : > { %s224_s18 = sshll.u32 %s1419_s17, 4  ;;  %s1420_s19 = smov [#allocation8]   ;;  %s225_s18 = int_to_ptr.vmem [resolvable:$true] %s224_s18 }
  0x15   : > { %p1121_p11 = pnand %p1120_p10, %p49_p1  ;;  %s236_s20 = sshll.u32 %s1420_s19, 4  ;;  %s237_s20 = int_to_ptr.vmem [resolvable:$true] %s236_s20 }
  0x16   : > { %s1516_s26 = sadd.s32 1, %s1416_s24   ;;  %s35_s30 = sadd.s32 1, %s1412_s23 }
  0x17   : > { %1123 = dma.hbm_to_vmem [thread:$0]  (!%p1121_p11), %s208_s7, 128, %s210_s10, [#allocation6]  }
  0x18   : > { %1126 = dma.hbm_to_vmem [thread:$0]  (!%p1121_p11), %s223_s13, 128, %s225_s18, [#allocation6]  }
  0x19   : > { %1129 = dma.hbm_to_vmem [thread:$0]  (!%p1121_p11), %s235_s16, 128, %s237_s20, [#allocation9]  }
  0x1a   : > { %s32_s29 = ssub.s32 %s1416_s24, %s1516_s26  ;;  %p42_p13 = scmp.ne.s32.totalorder %s1412_s23, %s1408_s22 }
  0x1b   : > { %p33_p12 = scmp.eq.s32.totalorder %s32_s29, 0  ;;  %p43_p0 = scmp.eq.s32.totalorder %s1416_s24, 0 }
  0x1c   : > { %p1529_p3 = por %p156_p2, %p42_p13  ;;  %p1144_p5 = scmp.lt.s32.totalorder %s1416_s24, 2 }
  0x1d   : > { %s1525_s9 = scalar_select %p33_p12, %s1412_s23, %s35_s30  }
  0x1e   : > { %s247_s10 = sand.u32 1, %s1412_s23   ;;  %s1072_s11 = sshll.u32 %s1416_s24, 3 }
  0x1f   : > { %p44_p7 = por %p43_p0, %p42_p13  ;;  %s1071_s12 = sshll.u32 %s247_s10, 3 }
  0x20   : > { %s1838_s0 = sld [smem:[#allocation18_spill]]  ;;  %s251_s17 = scalar_lea.vmem [#allocation2], %s1071_s12 }
  0x21   : > { %s259_s18 = sshll.u32 %s251_s17, 4  ;;  %p1539_p10 = pnand %p1144_p5, %p44_p7  ;;  %s260_s18 = int_to_ptr.vmem [resolvable:$true] %s259_s18 }
  0x22   : > { %s248_s20 = scalar_lea.sflag [#allocation3], %s247_s10 }
  0x23   : > { %p1284_p11 = pneg %p1539_p10 }
  0x26   : > { %s255_s15 = scalar_lea.hbm %s1838_s0, %s1072_s11  ;;  %s1287_s12 = scalar_lea.hbm %s1838_s0, 16 }
  0x27   : > { %s257_s16 = sshll.u32 %s255_s15, 4  ;;  %s258_s16 = int_to_ptr.hbm [resolvable:$true] %s257_s16 }
  0x28   : > { %s1280_s29 = sshra.s32 %s258_s16, 4  ;;  %s1281_s29 = int_to_ptr.hbm [resolvable:$true] %s1280_s29 }
  0x29   : > { %s1282_s30 = scalar_lea.hbm %s1281_s29, 8  ;;  %p1288_p0 = scmp.lt.s32.totalorder %s1281_s29, %s1838_s0 }
  0x2a   : > { %p1283_p2 = scmp.ne.s32.totalorder %s1281_s29, %s1282_s30  ;;  %p1289_p5 = scmp.lt.s32.totalorder %s1287_s12, %s1282_s30 }
  0x2c   : > { %p1285_p12 = pnand %p1284_p11, %p1283_p2  ;;  %p1290_p7 = por %p1289_p5, %p1288_p0 }
  0x2e   : > { %p1286_p13 = pneg %p1285_p12 }
  0x30   : > { %p1291_p9 = pnand %p1290_p7, %p1286_p13 }
  0x32   : > { %1294 = shalt.err (!%p1291_p9)
}
  0x33   : > { %1133 = dma.hbm_to_vmem [thread:$0]  (!%p1539_p10), %s258_s16, 128, %s260_s18, %s248_s20  }
  0x34   : > { %268 = sbr.rel (%p1500_p8) target bundleno = 2493 (0x9bd), region = 40  ;;  %s1556_s10 = sand.u32 (!%p1500_p8), 1, %s1408_s22  }
  0x35   : > { %s1074_s17 = sshll.u32 (!%p1500_p8), %s1556_s10, 3  ;;  %s271_s11 = scalar_lea.sflag (!%p1500_p8), [#allocation3], %s1556_s10 }
  0x36   : > { %s274_s29 = scalar_lea.vmem (!%p1500_p8), [#allocation2], %s1074_s17 }
  0x39   : > { %1383 = dma.done.wait (%p1487_p4), %s271_s11, 128  }
  0x3a   : > { %1385 = vsyncadd (%p1487_p4), %s271_s11, 4294967168 }
  0x3b   : > { %1387 = dma.done.wait (%p49_p1), [#allocation6], 256  }
  0x3c   : > { %1389 = vsyncadd (%p49_p1), [#allocation6], 4294967040 }
  0x3d   : > { %1391 = dma.done.wait (%p49_p1), [#allocation9], 128  }
  0x3e   : > { %1393 = vsyncadd (%p49_p1), [#allocation9], 4294967168  ;;  %vm331_vm0 = vcmask 261120   ;;  %v323_v0 = vld [vmem:[#allocation5] sm:$0xff]  ;;  %v327_v1 = vld [vmem:[%s274_s29] sm:$0xff]  ;;  %v484_v17 = vlaneseq  ;;  %v1421_v30 = vmov 0.0  }
  0x3f   : > { %v336_v2 = vsel %vm331_vm0, %v323_v0, 0  ;;  %v333_v3 = vsel %vm331_vm0, %v327_v1, 0  ;;  %v1185_v14 = vld [vmem:[%s1828_s2] ss:$0 sm:$0xff]  ;;  %vm493_vm2 = vcmask 64512   ;;  %v1598_v38 = vld [vmem:[#allocation7] sm:$0xff] }
  0x40   : > { %v353_v4 = vand.u32 4294901760, %v336_v2  ;;  %v355_v5 = vand.u32 4294901760, %v333_v3  ;;  %v1577_v23 = vshrl.u32 %v484_v17, 7  ;;  %v1579_v24 = vand.u32 127, %v484_v17  ;;  %v1608_v50 = vld [vmem:[#allocation8] sm:$0xff]  ;;  %s1763_s14 = scalar_lea.vmem [#allocation10], %s1074_s17 }
  0x41   : > { %s1081_s17 = sshll.u32 %s1478_s25, 3  ;;  %s922_s8 = sshll.u32 %s1763_s14, 4  ;;  %s923_s8 = int_to_ptr.vmem [resolvable:$true] %s922_s8 }
  0x42   : > { %v380_v6 = vsub.f32 %v336_v2, %v353_v4  ;;  %354 = vmatpush.xpose.msra.mxu0 %v353_v4  ;;  %430 = vmatpush.xpose.msra.mxu3 %v353_v4  ;;  %v356_v7 = vsub.f32 %v333_v3, %v355_v5  ;;  %vm488_vm1 = vcmp.eq.s32.totalorder %v1577_v23, %v1579_v24  ;;  %vm866_vm6 = vcmp.eq.s32.totalorder %v1577_v23, 1  ;;  %s920_s27 = scalar_lea.hbm %s1831_s5, %s1081_s17 }
  0x43   : > { %v1585_v31 = vsel %vm488_vm1, 1.0, %v1421_v30  ;;  %vm868_vm7 = vcmp.eq.s32.totalorder %v1577_v23, 2  ;;  %vm870_vm11 = vcmp.eq.s32.totalorder %v1577_v23, 3  ;;  %vm872_vm13 = vcmp.eq.s32.totalorder %v1577_v23, 4 }
  0x44   : > { %407 = vmatpush.xpose.msra.mxu2 %v380_v6  ;;  %v381_v8 = vand.u32 4294901760, %v380_v6  ;;  %v357_v9 = vand.u32 4294901760, %v356_v7  ;;  %vm874_vm1 = vcmp.eq.s32.totalorder %v1577_v23, 5 }
  0x46   : > { %v382_v10 = vsub.f32 %v380_v6, %v381_v8  ;;  %v358_v11 = vsub.f32 %v356_v7, %v357_v9  ;;  %434 = vmatmul.f32.vlgmr.msra.gmra.mxu3 %v357_v9  ;;  %456 = vmatpush.xpose.msrb.mxu0 %v381_v8 }
  0x47   : > { %410 = vmatmul.f32.vlgmr.msra.gmra.mxu2 %v356_v7 }
  0x48   : > { %v383_v12 = vand.u32 4294901760, %v382_v10  ;;  %v359_v13 = vand.u32 4294901760, %v358_v11 }
  0x4a   : > { %384 = vmatpush.xpose.msra.mxu1 %v383_v12  ;;  %360 = vmatmul.f32.vlgmr.msra.gmra.mxu0 %v359_v13 }
  0x4d   : > { %386 = vmatmul.f32.vlgmr.msra.gmra.mxu1 %v355_v5 }
  0x4e   : > { %478 = vmatpush.xpose.msrb.mxu1 %v353_v4 }
  0x52   : > { %458 = vmatmul.f32.vlgmr.msrb.gmra.mxu0 %v355_v5 }
  0x55   : > { %480 = vmatmul.f32.vlgmr.msrb.gmra.mxu1 %v355_v5 }
  0xc7   : > { %v361_v15 = vpop.f32.mrf.mxu0 }
  0xc8   : > { %v362_v16 = vadd.f32 %v1185_v14, %v361_v15 }
  0xc9   : > { %v435_v21 = vpop.f32.mrf.mxu3 }
  0xca   : > { %v387_v18 = vpop.f32.mrf.mxu1  ;;  %v411_v19 = vpop.f32.mrf.mxu2 }
  0xcb   : > { %v388_v20 = vadd.f32 %v387_v18, %v362_v16 }
  0xcd   : > { %v412_v22 = vadd.f32 %v411_v19, %v388_v20 }
  0xcf   : > { %v436_v25 = vadd.f32 %v435_v21, %v412_v22  ;;  %v459_v26 = vpop.f32.mrf.mxu0 }
  0xd1   : > { %v460_v27 = vadd.f32 %v459_v26, %v436_v25 }
  0xd2   : > { %v481_v28 = vpop.f32.mrf.mxu1 }
  0xd3   : > { %v1583_v29 = vadd.f32 %v481_v28, %v460_v27 }
  0xd5   : > { %v1588_v32 = vperm.slane %v1583_v29, 0  ;;  %v502_v35 = vperm.slane %v1583_v29, 2  ;;  %v497_v40 = vperm.slane %v1583_v29, 1  ;;  %v512_v55 = vperm.slane %v1583_v29, 4 }
  0xd6   : > { %v507_v59 = vperm.slane %v1583_v29, 3  ;;  %v522_v9 = vperm.slane %v1583_v29, 6  ;;  %v517_v13 = vperm.slane %v1583_v29, 5 }
  0xd7   : > { %v492_v33 = vmul.f32 %v1585_v31, %v1588_v32  ;;  %v503_v36 = vmul.f32 %v1585_v31, %v502_v35  ;;  %v513_v56 = vmul.f32 %v1585_v31, %v512_v55  ;;  %v498_v30 = vmul.f32 %v1585_v31, %v497_v40 }
  0xd8   : > { %v523_v10 = vmul.f32 %v1585_v31, %v522_v9 }
  0xd9   : > { %v494_v34 = vsel %vm493_vm2, %v492_v33, 0.0  ;;  %v504_v37 = vsel %vm493_vm2, %v503_v36, 0.0  ;;  %v514_v57 = vsel %vm493_vm2, %v513_v56, 0.0  ;;  %v499_v33 = vsel %vm493_vm2, %v498_v30, 0.0 }
  0xda   : > { %495 = vadd.xlane.f32.xlu0 %v494_v34  ;;  %v524_v11 = vsel %vm493_vm2, %v523_v10, 0.0  ;;  %v508_v34 = vmul.f32 %v1585_v31, %v507_v59 }
  0xdc   : > { %v509_v36 = vsel %vm493_vm2, %v508_v34, 0.0 }
  0xe2   : > { %505 = vadd.xlane.f32.xlu0 %v504_v37 }
 0x14d   : > { %v496_v39 = vpop.xlane.xlu0 %495 }
 0x14e   : > { %v527_v41 = vadd.f32 %v496_v39, %v1598_v38  ;;  %v684_v39 = vperm.slane %v1583_v29, 7 }
 0x150   : > { %v1602_v42 = vadd.f32 %v527_v41, %v497_v40 }
 0x152   : > { %v531_v43 = vsel %vm493_vm2, %v1602_v42, -inf }
 0x153   : > { %v532_v44 = vrot.slane %v531_v43, 4 }
 0x155   : > { %v533_v45 = vmax.f32 %v531_v43, %v532_v44  ;;  %v506_v52 = vpop.xlane.xlu0 %505 }
 0x157   : > { %v534_v46 = vrot.slane %v533_v45, 2 }
 0x159   : > { %v535_v47 = vmax.f32 %v533_v45, %v534_v46 }
 0x15b   : > { %v536_v48 = vrot.slane %v535_v47, 1 }
 0x15d   : > { %v1606_v49 = vmax.f32 %v535_v47, %v536_v48 }
 0x15f   : > { %vm541_vm3 = vcmp.eq.f32.partialorder %v1602_v42, %v1606_v49  ;;  %v555_v51 = vadd.f32 %v1606_v49, %v1608_v50 }
 0x161   : > { %v556_v53 = vadd.f32 %v555_v51, %v506_v52 }
 0x163   : > { %v564_v54 = vsel %vm493_vm2, %v556_v53, -inf }
 0x164   : > { %565 = vmax.xlane.f32.xlu1 %v564_v54 }
 0x16c   : > { %515 = vadd.xlane.f32.xlu1 %v514_v57 }
 0x1d7   : > { %v566_v58 = vpop.xlane.xlu1 %565 }
 0x1d8   : > { %v579_v60 = vadd.f32 %v566_v58, %v1598_v38 }
 0x1da   : > { %v1622_v61 = vadd.f32 %v579_v60, %v507_v59 }
 0x1dc   : > { %v583_v62 = vsel %vm493_vm2, %v1622_v61, -inf }
 0x1dd   : > { %v584_v63 = vrot.slane %v583_v62, 4 }
 0x1df   : > { %v585_v0 = vmax.f32 %v583_v62, %v584_v63  ;;  %v516_v6 = vpop.xlane.xlu1 %515  ;;  %v529_v62 = vadd.f32 %v1588_v32, %v1608_v50 }
 0x1e1   : > { %v586_v1 = vrot.slane %v585_v0, 2 }
 0x1e3   : > { %v587_v2 = vmax.f32 %v585_v0, %v586_v1  ;;  %v518_v1 = vmul.f32 %v1585_v31, %v517_v13 }
 0x1e5   : > { %v588_v3 = vrot.slane %v587_v2, 1 }
 0x1e7   : > { %v1626_v4 = vmax.f32 %v587_v2, %v588_v3  ;;  %v519_v2 = vsel %vm493_vm2, %v518_v1, 0.0 }
 0x1e9   : > { %v607_v5 = vadd.f32 %v1626_v4, %v1608_v50 }
 0x1eb   : > { %v608_v7 = vadd.f32 %v607_v5, %v516_v6 }
 0x1ed   : > { %v616_v8 = vsel %vm493_vm2, %v608_v7, -inf }
 0x1ee   : > { %617 = vmax.xlane.f32.xlu2 %v616_v8 }
 0x1f6   : > { %525 = vadd.xlane.f32.xlu2 %v524_v11 }
 0x261   : > { %v618_v12 = vpop.xlane.xlu2 %617 }
 0x262   : > { %v631_v14 = vadd.f32 %v618_v12, %v1598_v38 }
 0x264   : > { %v1638_v15 = vadd.f32 %v631_v14, %v517_v13 }
 0x266   : > { %v635_v16 = vsel %vm493_vm2, %v1638_v15, -inf }
 0x267   : > { %v636_v17 = vrot.slane %v635_v16, 4 }
 0x269   : > { %v637_v18 = vmax.f32 %v635_v16, %v636_v17  ;;  %v526_v26 = vpop.xlane.xlu2 %525 }
 0x26b   : > { %v638_v19 = vrot.slane %v637_v18, 2 }
 0x26d   : > { %v639_v20 = vmax.f32 %v637_v18, %v638_v19  ;;  %v867_v19 = vsel %vm866_vm6, %v1606_v49, %v1588_v32 }
 0x26f   : > { %v640_v21 = vrot.slane %v639_v20, 1 }
 0x271   : > { %v1642_v22 = vmax.f32 %v639_v20, %v640_v21 }
 0x273   : > { %v659_v25 = vadd.f32 %v1642_v22, %v1608_v50 }
 0x275   : > { %v660_v27 = vadd.f32 %v659_v25, %v526_v26 }
 0x277   : > { %v668_v28 = vsel %vm493_vm2, %v660_v27, -inf }
 0x278   : > { %669 = vmax.xlane.f32.xlu0 %v668_v28 }
 0x280   : > { %500 = vadd.xlane.f32.xlu0 %v499_v33 }
 0x288   : > { %510 = vadd.xlane.f32.xlu0 %v509_v36 }
 0x2eb   : > { %v670_v37 = vpop.xlane.xlu0 %669 }
 0x2ec   : > { %v683_v41 = vadd.f32 %v670_v37, %v1598_v38 }
 0x2ee   : > { %v685_v43 = vadd.f32 %v684_v39, %v683_v41 }
 0x2f0   : > { %v686_v44 = vsel %vm493_vm2, %v685_v43, -inf }
 0x2f1   : > { %v687_v45 = vrot.slane %v686_v44, 4 }
 0x2f3   : > { %v688_v46 = vmax.f32 %v686_v44, %v687_v45  ;;  %v501_v60 = vpop.xlane.xlu0 %500 }
 0x2f4   : > { %v530_v63 = vadd.f32 %v529_v62, %v501_v60 }
 0x2f5   : > { %v689_v47 = vrot.slane %v688_v46, 2 }
 0x2f6   : > { %v538_v0 = vsel %vm493_vm2, %v530_v63, -inf }
 0x2f7   : > { %v690_v40 = vmax.f32 %v688_v46, %v689_v47 }
 0x2f9   : > { %v691_v48 = vrot.slane %v690_v40, 1 }
 0x2fb   : > { %v1654_v51 = vmax.f32 %v690_v40, %v691_v48  ;;  %v511_v21 = vpop.xlane.xlu0 %510 }
 0x2fd   : > { %v705_v52 = vsel %vm493_vm2, %v1654_v51, -inf  ;;  %vm693_vm9 = vcmp.eq.f32.partialorder %v685_v43, %v1654_v51 }
 0x2fe   : > { %706 = vmax.xlane.f32.xlu1 %v705_v52  ;;  %v694_v32 = vsel %vm693_vm9, %v1577_v23, 8  ;;  %vm728_vm9 = vcmp.eq.s32.totalorder %v1579_v24, 7 }
 0x2ff   : > { %v695_v36 = vsel %vm493_vm2, %v694_v32, 2147483647 }
 0x300   : > { %v696_v39 = vrot.slane %v695_v36, 4 }
 0x302   : > { %vm697_vm10 = vcmp.lt.s32.totalorder %v695_v36, %v696_v39 }
 0x303   : > { %v698_v40 = vsel %vm697_vm10, %v695_v36, %v696_v39 }
 0x304   : > { %v699_v48 = vrot.slane %v698_v40, 2 }
 0x306   : > { %vm700_vm12 = vcmp.lt.s32.totalorder %v698_v40, %v699_v48 }
 0x371   : > { %v707_v53 = vpop.xlane.xlu1 %706 }
 0x372   : > { %1084 = vpush %v707_v53 }
 0x3a3   : > { %s1085_s16 = spop %1084 }
 0x3a4   : > { %v709_v54 = vstv %s1085_s16  ;;  %s924_s16 = sshll.u32 %s920_s27, 4  ;;  %s925_s16 = int_to_ptr.hbm [resolvable:$true] %s924_s16 }
 0x3a5   : > { %vm710_vm4 = vcmp.eq.f32.partialorder %v1654_v51, %v709_v54 }
 0x3a6   : > { %v711_v56 = vsel %vm710_vm4, %v1579_v24, 8  ;;  %vm876_vm4 = vcmp.eq.s32.totalorder %v1577_v23, 6 }
 0x3a7   : > { %v712_v57 = vsel %vm493_vm2, %v711_v56, 2147483647 }
 0x3a8   : > { %v714_v58 = vshra.s32 %v712_v57, 16  ;;  %v713_v3 = vand.u32 65535, %v712_v57  ;;  %v701_v57 = vsel %vm700_vm12, %v698_v40, %v699_v48 }
 0x3a9   : > { %v702_v62 = vrot.slane %v701_v57, 1 }
 0x3aa   : > { %v716_v59 = vcvt.s32.f32 %v714_v58  ;;  %v715_v6 = vcvt.s32.f32 %v713_v3 }
 0x3ab   : > { %vm703_vm15 = vcmp.lt.s32.totalorder %v701_v57, %v702_v62 }
 0x3ac   : > { %717 = vmin.xlane.f32.xlu2 %v716_v59  ;;  %v704_v1 = vsel %vm703_vm15, %v701_v57, %v702_v62 }
 0x3b4   : > { %539 = vmax.xlane.f32.xlu2 %v538_v0 }
 0x3bc   : > { %520 = vadd.xlane.f32.xlu2 %v519_v2 }
 0x41f   : > { %v718_v5 = vpop.xlane.xlu2 %717 }
 0x420   : > { %vm719_vm5 = vcmp.eq.f32.partialorder %v716_v59, %v718_v5  ;;  %v724_v27 = vcvt.f32.s32 %v718_v5 }
 0x421   : > { %v720_v7 = vsel %vm719_vm5, %v715_v6, inf }
 0x422   : > { %721 = vmin.xlane.f32.xlu1 %v720_v7  ;;  %v725_v30 = vshll.u32 %v724_v27, 16 }
 0x427   : > { %v540_v8 = vpop.xlane.xlu2 %539 }
 0x428   : > { %v553_v10 = vadd.f32 %v540_v8, %v1598_v38 }
 0x42a   : > { %v1669_v11 = vadd.f32 %v553_v10, %v502_v35 }
 0x42c   : > { %v557_v12 = vsel %vm493_vm2, %v1669_v11, -inf }
 0x42d   : > { %v558_v31 = vrot.slane %v557_v12, 4 }
 0x42f   : > { %v559_v13 = vmax.f32 %v557_v12, %v558_v31  ;;  %v521_v59 = vpop.xlane.xlu2 %520 }
 0x431   : > { %v560_v14 = vrot.slane %v559_v13, 2 }
 0x433   : > { %v561_v16 = vmax.f32 %v559_v13, %v560_v14 }
 0x435   : > { %v562_v17 = vrot.slane %v561_v16, 1 }
 0x437   : > { %v1675_v18 = vmax.f32 %v561_v16, %v562_v17 }
 0x439   : > { %vm567_vm8 = vcmp.eq.f32.partialorder %v1669_v11, %v1675_v18  ;;  %v581_v35 = vadd.f32 %v1675_v18, %v1608_v50  ;;  %v869_v20 = vsel %vm868_vm7, %v1675_v18, %v867_v19 }
 0x43b   : > { %v582_v25 = vadd.f32 %v581_v35, %v511_v21 }
 0x43d   : > { %v590_v26 = vsel %vm493_vm2, %v582_v25, -inf }
 0x43e   : > { %591 = vmax.xlane.f32.xlu1 %v590_v26 }
 0x495   : > { %v722_v28 = vpop.xlane.xlu1 %721 }
 0x496   : > { %v723_v33 = vcvt.f32.s32 %v722_v28 }
 0x498   : > { %v726_v34 = vadd.s32 %v725_v30, %v723_v33 }
 0x49a   : > { %1086 = vpush %v726_v34 }
 0x4b1   : > { %v592_v37 = vpop.xlane.xlu1 %591 }
 0x4b2   : > { %v605_v41 = vadd.f32 %v592_v37, %v1598_v38 }
 0x4b4   : > { %v1691_v44 = vadd.f32 %v605_v41, %v512_v55  ;;  %v871_v55 = vsel %vm870_vm11, %v1626_v4, %v869_v20  ;;  %vm747_vm11 = vcmp.eq.s32.totalorder %v1579_v24, 6 }
 0x4b6   : > { %v609_v45 = vsel %vm493_vm2, %v1691_v44, -inf }
 0x4b7   : > { %v610_v46 = vrot.slane %v609_v45, 4 }
 0x4b9   : > { %v611_v47 = vmax.f32 %v609_v45, %v610_v46 }
 0x4bb   : > { %v612_v43 = vrot.slane %v611_v47, 2 }
 0x4bd   : > { %v613_v52 = vmax.f32 %v611_v47, %v612_v43 }
 0x4bf   : > { %v614_v53 = vrot.slane %v613_v52, 1 }
 0x4c1   : > { %v1697_v54 = vmax.f32 %v613_v52, %v614_v53 }
 0x4c3   : > { %vm619_vm14 = vcmp.eq.f32.partialorder %v1691_v44, %v1697_v54  ;;  %v633_v56 = vadd.f32 %v1697_v54, %v1608_v50  ;;  %v873_v58 = vsel %vm872_vm13, %v1697_v54, %v871_v55  ;;  %vm645_vm13 = vcmp.eq.f32.partialorder %v1638_v15, %v1642_v22 }
 0x4c4   : > { %v875_v29 = vsel %vm874_vm1, %v1642_v22, %v873_v58  ;;  %v646_v62 = vsel %vm645_vm13, %v1577_v23, 8 }
 0x4c5   : > { %v634_v60 = vadd.f32 %v633_v56, %v521_v59 }
 0x4c7   : > { %v642_v63 = vsel %vm493_vm2, %v634_v60, -inf }
 0x4c8   : > { %643 = vmax.xlane.f32.xlu2 %v642_v63  ;;  %v647_v63 = vsel %vm493_vm2, %v646_v62, 2147483647 }
 0x4cb   : > { %s1706_s18 = spop %1086 }
 0x4cc   : > { %v729_v0 = vstv %s1706_s18  ;;  %s906_s18 = scalar_lea.sflag [#allocation4], %s1556_s10 }
 0x4cd   : > { %vm731_vm0 = vcmp.eq.s32.totalorder %v1579_v24, %v729_v0  ;;  %v730_v39 = vsel %vm728_vm9, %v729_v0, 0  ;;  %v648_v0 = vrot.slane %v647_v63, 4 }
 0x4ce   : > { %v732_v2 = vsel %vm731_vm0, %v704_v1, 0 }
 0x4cf   : > { %v733_v50 = vsel %vm493_vm2, %v732_v2, 0  ;;  %vm649_vm15 = vcmp.lt.s32.totalorder %v647_v63, %v648_v0 }
 0x4d0   : > { %v735_v3 = vshrl.u32 %v733_v50, 16  ;;  %v734_v5 = vand.u32 65535, %v733_v50  ;;  %v650_v1 = vsel %vm649_vm15, %v647_v63, %v648_v0 }
 0x4d1   : > { %v651_v2 = vrot.slane %v650_v1, 2 }
 0x4d2   : > { %v737_v6 = vcvt.s32.f32 %v735_v3  ;;  %v736_v7 = vcvt.s32.f32 %v734_v5 }
 0x4d3   : > { %vm652_vm0 = vcmp.lt.s32.totalorder %v650_v1, %v651_v2 }
 0x4d4   : > { %740 = vadd.xlane.f32.xlu0 %v737_v6  ;;  %738 = vadd.xlane.f32.xlu1 %v736_v7  ;;  %v653_v50 = vsel %vm652_vm0, %v650_v1, %v651_v2  ;;  %vm804_vm0 = vcmp.eq.s32.totalorder %v1579_v24, 3 }
 0x4d5   : > { %v654_v3 = vrot.slane %v653_v50, 1 }
 0x4d7   : > { %vm655_vm1 = vcmp.lt.s32.totalorder %v653_v50, %v654_v3 }
 0x4d8   : > { %v656_v6 = vsel %vm655_vm1, %v653_v50, %v654_v3 }
 0x53b   : > { %v644_v8 = vpop.xlane.xlu2 %643 }
 0x53c   : > { %v657_v10 = vadd.f32 %v644_v8, %v1598_v38 }
 0x53e   : > { %v658_v12 = vadd.f32 %v657_v10, %v522_v9 }
 0x540   : > { %v661_v31 = vsel %vm493_vm2, %v658_v12, -inf }
 0x541   : > { %v662_v13 = vrot.slane %v661_v31, 4 }
 0x543   : > { %v663_v14 = vmax.f32 %v661_v31, %v662_v13 }
 0x545   : > { %v664_v16 = vrot.slane %v663_v14, 2 }
 0x547   : > { %v665_v17 = vmax.f32 %v663_v14, %v664_v16  ;;  %v739_v19 = vpop.xlane.xlu1 %738  ;;  %v741_v35 = vpop.xlane.xlu0 %740 }
 0x548   : > { %v743_v20 = vcvt.f32.s32 %v741_v35  ;;  %v742_v25 = vcvt.f32.s32 %v739_v19 }
 0x549   : > { %v666_v21 = vrot.slane %v665_v17, 1 }
 0x54a   : > { %v744_v26 = vshll.u32 %v743_v20, 16  ;;  %v620_v20 = vsel %vm619_vm14, %v1577_v23, 8  ;;  %vm593_vm14 = vcmp.eq.f32.partialorder %v1622_v61, %v1626_v4 }
 0x54b   : > { %v667_v38 = vmax.f32 %v665_v17, %v666_v21  ;;  %v621_v21 = vsel %vm493_vm2, %v620_v20, 2147483647 }
 0x54c   : > { %v745_v27 = vadd.s32 %v744_v26, %v742_v25  ;;  %v622_v25 = vrot.slane %v621_v21, 4 }
 0x54d   : > { %v1718_v9 = vsel %vm876_vm4, %v667_v38, %v875_v29  ;;  %vm671_vm5 = vcmp.eq.f32.partialorder %v658_v12, %v667_v38  ;;  %vm766_vm4 = vcmp.eq.s32.totalorder %v1579_v24, 5 }
 0x54e   : > { %1088 = vpush %v745_v27  ;;  %v672_v28 = vsel %vm671_vm5, %v1577_v23, 8 }
 0x54f   : > { %v673_v30 = vsel %vm493_vm2, %v672_v28, 2147483647 }
 0x550   : > { %v674_v33 = vrot.slane %v673_v30, 4 }
 0x552   : > { %vm675_vm6 = vcmp.lt.s32.totalorder %v673_v30, %v674_v33 }
 0x553   : > { %v676_v34 = vsel %vm675_vm6, %v673_v30, %v674_v33  ;;  %vm623_vm6 = vcmp.lt.s32.totalorder %v621_v21, %v622_v25 }
 0x554   : > { %v677_v32 = vrot.slane %v676_v34, 2  ;;  %v624_v26 = vsel %vm623_vm6, %v621_v21, %v622_v25 }
 0x555   : > { %v625_v38 = vrot.slane %v624_v26, 2 }
 0x556   : > { %vm678_vm7 = vcmp.lt.s32.totalorder %v676_v34, %v677_v32 }
 0x557   : > { %v679_v36 = vsel %vm678_vm7, %v676_v34, %v677_v32  ;;  %vm626_vm7 = vcmp.lt.s32.totalorder %v624_v26, %v625_v38 }
 0x558   : > { %v680_v37 = vrot.slane %v679_v36, 1  ;;  %v627_v27 = vsel %vm626_vm7, %v624_v26, %v625_v38 }
 0x559   : > { %v628_v29 = vrot.slane %v627_v27, 1 }
 0x55a   : > { %vm681_vm10 = vcmp.lt.s32.totalorder %v679_v36, %v680_v37 }
 0x55b   : > { %v682_v45 = vsel %vm681_vm10, %v679_v36, %v680_v37  ;;  %vm629_vm9 = vcmp.lt.s32.totalorder %v627_v27, %v628_v29  ;;  %vm785_vm10 = vcmp.eq.s32.totalorder %v1579_v24, 4 }
 0x55c   : > { %v630_v30 = vsel %vm629_vm9, %v627_v27, %v628_v29  ;;  %vm823_vm9 = vcmp.eq.s32.totalorder %v1579_v24, 2 }
 0x57f   : > { %s1089_s19 = spop %1088 }
 0x580   : > { %v748_v41 = vstv %s1089_s19  ;;  %s1324_s19 = sshra.s32 %s925_s16, 4  ;;  %s1325_s19 = int_to_ptr.hbm [resolvable:$true] %s1324_s19 }
 0x581   : > { %v749_v46 = vsel %vm747_vm11, %v748_v41, %v730_v39  ;;  %vm750_vm12 = vcmp.eq.s32.totalorder %v1579_v24, %v748_v41  ;;  %p1331_p9 = scmp.lt.s32.totalorder %s1325_s19, %s1831_s5 }
 0x582   : > { %v751_v47 = vsel %vm750_vm12, %v682_v45, 0 }
 0x583   : > { %v752_v40 = vsel %vm493_vm2, %v751_v47, 0 }
 0x584   : > { %v754_v43 = vshrl.u32 %v752_v40, 16  ;;  %v753_v48 = vand.u32 65535, %v752_v40 }
 0x586   : > { %v756_v52 = vcvt.s32.f32 %v754_v43  ;;  %v755_v53 = vcvt.s32.f32 %v753_v48  ;;  %v594_v43 = vsel %vm593_vm14, %v1577_v23, 8 }
 0x587   : > { %v595_v48 = vsel %vm493_vm2, %v594_v43, 2147483647 }
 0x588   : > { %759 = vadd.xlane.f32.xlu0 %v756_v52  ;;  %757 = vadd.xlane.f32.xlu1 %v755_v53  ;;  %v596_v52 = vrot.slane %v595_v48, 4 }
 0x58a   : > { %vm597_vm12 = vcmp.lt.s32.totalorder %v595_v48, %v596_v52 }
 0x58b   : > { %v598_v53 = vsel %vm597_vm12, %v595_v48, %v596_v52 }
 0x5fb   : > { %v760_v55 = vpop.xlane.xlu0 %759  ;;  %v758_v56 = vpop.xlane.xlu1 %757 }
 0x5fc   : > { %v762_v57 = vcvt.f32.s32 %v760_v55  ;;  %v761_v59 = vcvt.f32.s32 %v758_v56  ;;  %v599_v55 = vrot.slane %v598_v53, 2 }
 0x5fe   : > { %v763_v58 = vshll.u32 %v762_v57, 16  ;;  %vm600_vm13 = vcmp.lt.s32.totalorder %v598_v53, %v599_v55 }
 0x5ff   : > { %v601_v56 = vsel %vm600_vm13, %v598_v53, %v599_v55  ;;  %v542_v53 = vsel %vm541_vm3, %v1577_v23, 8 }
 0x600   : > { %v764_v60 = vadd.s32 %v763_v58, %v761_v59  ;;  %v602_v57 = vrot.slane %v601_v56, 1  ;;  %v543_v55 = vsel %vm493_vm2, %v542_v53, 2147483647 }
 0x602   : > { %1090 = vpush %v764_v60  ;;  %vm603_vm15 = vcmp.lt.s32.totalorder %v601_v56, %v602_v57 }
 0x603   : > { %v604_v59 = vsel %vm603_vm15, %v601_v56, %v602_v57  ;;  %v544_v56 = vrot.slane %v543_v55, 4 }
 0x605   : > { %vm545_vm13 = vcmp.lt.s32.totalorder %v543_v55, %v544_v56 }
 0x606   : > { %v546_v57 = vsel %vm545_vm13, %v543_v55, %v544_v56 }
 0x633   : > { %s1091_s20 = spop %1090 }
 0x634   : > { %v767_v5 = vstv %s1091_s20  ;;  %s1326_s20 = scalar_lea.hbm %s1325_s19, 8 }
 0x635   : > { %v768_v7 = vsel %vm766_vm4, %v767_v5, %v749_v46  ;;  %vm769_vm5 = vcmp.eq.s32.totalorder %v1579_v24, %v767_v5  ;;  %vm878_vm4 = vcmp.eq.s32.totalorder %v1577_v23, 7  ;;  %p1327_p1 = scmp.ne.s32.totalorder %s1325_s19, %s1326_s20 }
 0x636   : > { %v770_v15 = vsel %vm769_vm5, %v656_v6, 0  ;;  %v879_v2 = vsel %vm878_vm4, %v1654_v51, %v1718_v9  ;;  %v568_v51 = vsel %vm567_vm8, %v1577_v23, 8 }
 0x637   : > { %v771_v22 = vsel %vm493_vm2, %v770_v15, 0  ;;  %v880_v50 = vsel %vm493_vm2, %v879_v2, -inf  ;;  %v569_v9 = vsel %vm493_vm2, %v568_v51, 2147483647  ;;  %p1328_p4 = pnand %p1327_p1, %p1529_p3 }
 0x638   : > { %v773_v8 = vshrl.u32 %v771_v22, 16  ;;  %v772_v10 = vand.u32 65535, %v771_v22 }
 0x639   : > { %p1329_p8 = pneg %p1328_p4 }
 0x63a   : > { %v775_v12 = vcvt.s32.f32 %v773_v8  ;;  %v774_v31 = vcvt.s32.f32 %v772_v10 }
 0x63c   : > { %778 = vadd.xlane.f32.xlu2 %v775_v12  ;;  %776 = vadd.xlane.f32.xlu0 %v774_v31 }
 0x6af   : > { %v779_v13 = vpop.xlane.xlu2 %778  ;;  %v777_v14 = vpop.xlane.xlu0 %776 }
 0x6b0   : > { %v781_v16 = vcvt.f32.s32 %v779_v13  ;;  %v780_v19 = vcvt.f32.s32 %v777_v14  ;;  %v570_v14 = vrot.slane %v569_v9, 4 }
 0x6b2   : > { %v782_v17 = vshll.u32 %v781_v16, 16  ;;  %vm571_vm5 = vcmp.lt.s32.totalorder %v569_v9, %v570_v14 }
 0x6b3   : > { %v572_v16 = vsel %vm571_vm5, %v569_v9, %v570_v14 }
 0x6b4   : > { %v783_v35 = vadd.s32 %v782_v17, %v780_v19  ;;  %v573_v17 = vrot.slane %v572_v16, 2 }
 0x6b6   : > { %1092 = vpush %v783_v35  ;;  %vm574_vm6 = vcmp.lt.s32.totalorder %v572_v16, %v573_v17 }
 0x6b7   : > { %v575_v19 = vsel %vm574_vm6, %v572_v16, %v573_v17 }
 0x6b8   : > { %v576_v35 = vrot.slane %v575_v19, 1 }
 0x6ba   : > { %vm577_vm7 = vcmp.lt.s32.totalorder %v575_v19, %v576_v35 }
 0x6bb   : > { %v578_v21 = vsel %vm577_vm7, %v575_v19, %v576_v35 }
 0x6e7   : > { %s1093_s30 = spop %1092 }
 0x6e8   : > { %v786_v28 = vstv %s1093_s30 }
 0x6e9   : > { %v787_v33 = vsel %vm785_vm10, %v786_v28, %v768_v7  ;;  %vm788_vm11 = vcmp.eq.s32.totalorder %v1579_v24, %v786_v28 }
 0x6ea   : > { %v789_v44 = vsel %vm788_vm11, %v630_v30, 0 }
 0x6eb   : > { %v790_v54 = vsel %vm493_vm2, %v789_v44, 0 }
 0x6ec   : > { %v792_v34 = vshrl.u32 %v790_v54, 16  ;;  %v791_v32 = vand.u32 65535, %v790_v54 }
 0x6ee   : > { %v794_v36 = vcvt.s32.f32 %v792_v34  ;;  %v793_v37 = vcvt.s32.f32 %v791_v32 }
 0x6f0   : > { %797 = vadd.xlane.f32.xlu1 %v794_v36  ;;  %795 = vadd.xlane.f32.xlu2 %v793_v37 }
 0x763   : > { %v798_v39 = vpop.xlane.xlu1 %797  ;;  %v796_v41 = vpop.xlane.xlu2 %795 }
 0x764   : > { %v800_v45 = vcvt.f32.s32 %v798_v39  ;;  %v799_v47 = vcvt.f32.s32 %v796_v41 }
 0x766   : > { %v801_v46 = vshll.u32 %v800_v45, 16 }
 0x768   : > { %v802_v40 = vadd.s32 %v801_v46, %v799_v47 }
 0x76a   : > { %1094 = vpush %v802_v40 }
 0x79b   : > { %s1095_s13 = spop %1094 }
 0x79c   : > { %v805_v58 = vstv %s1095_s13 }
 0x79d   : > { %v806_v60 = vsel %vm804_vm0, %v805_v58, %v787_v33  ;;  %vm807_vm1 = vcmp.eq.s32.totalorder %v1579_v24, %v805_v58  ;;  %v547_v58 = vrot.slane %v546_v57, 2 }
 0x79e   : > { %v808_v61 = vsel %vm807_vm1, %v604_v59, 0  ;;  %vm842_vm1 = vcmp.eq.s32.totalorder %v1579_v24, 1 }
 0x79f   : > { %v809_v4 = vsel %vm493_vm2, %v808_v61, 0  ;;  %vm548_vm15 = vcmp.lt.s32.totalorder %v546_v57, %v547_v58 }
 0x7a0   : > { %v811_v62 = vshrl.u32 %v809_v4, 16  ;;  %v810_v63 = vand.u32 65535, %v809_v4  ;;  %v549_v59 = vsel %vm548_vm15, %v546_v57, %v547_v58 }
 0x7a2   : > { %v813_v0 = vcvt.s32.f32 %v811_v62  ;;  %v812_v1 = vcvt.s32.f32 %v810_v63 }
 0x7a4   : > { %816 = vadd.xlane.f32.xlu0 %v813_v0  ;;  %814 = vadd.xlane.f32.xlu1 %v812_v1 }
 0x7ac   : > { %881 = vmax.xlane.f32.xlu1 %v880_v50 }
 0x817   : > { %v817_v3 = vpop.xlane.xlu0 %816  ;;  %v815_v5 = vpop.xlane.xlu1 %814 }
 0x818   : > { %v819_v6 = vcvt.f32.s32 %v817_v3  ;;  %v818_v15 = vcvt.f32.s32 %v815_v5 }
 0x81a   : > { %v820_v7 = vshll.u32 %v819_v6, 16 }
 0x81c   : > { %v821_v22 = vadd.s32 %v820_v7, %v818_v15 }
 0x81e   : > { %1096 = vpush %v821_v22 }
 0x81f   : > { %v882_v8 = vpop.xlane.xlu1 %881 }
 0x820   : > { %v883_v10 = vsub.f32 %v879_v2, %v882_v8 }
 0x822   : > { %v884_v12 = vmul.f32 1.442695, %v883_v10 }
 0x824   : > { %1186 = vpow2.f32 %v884_v12 }
 0x82a   : > { %v1187_v31 = vpop.eup %1186 }
 0x82b   : > { %v886_v13 = vsel %vm493_vm2, %v1187_v31, 0.0 }
 0x82c   : > { %887 = vadd.xlane.f32.xlu1 %v886_v13 }
 0x84f   : > { %s1097_s12 = spop %1096 }
 0x850   : > { %v824_v20 = vstv %s1097_s12  ;;  %s1330_s12 = scalar_lea.hbm %s1831_s5, 16 }
 0x851   : > { %v825_v25 = vsel %vm823_vm9, %v824_v20, %v806_v60  ;;  %vm826_vm10 = vcmp.eq.s32.totalorder %v1579_v24, %v824_v20  ;;  %v550_v60 = vrot.slane %v549_v59, 1  ;;  %p1332_p10 = scmp.lt.s32.totalorder %s1330_s12, %s1326_s20 }
 0x852   : > { %v827_v11 = vsel %vm826_vm10, %v578_v21, 0 }
 0x853   : > { %v828_v18 = vsel %vm493_vm2, %v827_v11, 0  ;;  %vm551_vm0 = vcmp.lt.s32.totalorder %v549_v59, %v550_v60  ;;  %p1333_p2 = por %p1332_p10, %p1331_p9 }
 0x854   : > { %v830_v26 = vshrl.u32 %v828_v18, 16  ;;  %v829_v38 = vand.u32 65535, %v828_v18  ;;  %v552_v4 = vsel %vm551_vm0, %v549_v59, %v550_v60 }
 0x855   : > { %p1334_p11 = pnand %p1333_p2, %p1329_p8 }
 0x856   : > { %v832_v27 = vcvt.s32.f32 %v830_v26  ;;  %v831_v29 = vcvt.s32.f32 %v829_v38 }
 0x858   : > { %835 = vadd.xlane.f32.xlu2 %v832_v27  ;;  %833 = vadd.xlane.f32.xlu0 %v831_v29 }
 0x89f   : > { %v888_v28 = vpop.xlane.xlu1 %887 }
 0x8a0   : > { %1188 = vrcp.f32 %v888_v28  ;;  %v900_v54 = vand.u32 2147483648, %v888_v28  ;;  %v898_v32 = vand.u32 2147483647, %v888_v28  ;;  %vm894_vm11 = vweird.f32 %v888_v28 }
 0x8a2   : > { %v901_v37 = vor.u32 1.1754944e-38, %v900_v54  ;;  %vm899_vm12 = vcmp.eq.f32.partialorder %v898_v32, 8.507059e+37 }
 0x8a6   : > { %v1189_v30 = vpop.eup %1188 }
 0x8a7   : > { %v890_v33 = vmul.f32 %v1189_v30, %v888_v28  ;;  %vm895_vm8 = vweird.f32 %v1189_v30 }
 0x8a8   : > { %vm896_vm14 = vmor %vm894_vm11, %vm895_vm8 }
 0x8a9   : > { %v891_v44 = vsub.f32 1.0, %v890_v33 }
 0x8ab   : > { %v892_v34 = vmul.f32 %v1189_v30, %v891_v44 }
 0x8ad   : > { %v893_v36 = vadd.f32 %v1189_v30, %v892_v34 }
 0x8af   : > { %v897_v39 = vsel %vm896_vm14, %v1189_v30, %v893_v36 }
 0x8b0   : > { %v902_v41 = vsel %vm899_vm12, %v901_v37, %v897_v39 }
 0x8b1   : > { %v903_v45 = vmul.f32 %v1187_v31, %v902_v41 }
 0x8b3   : > { %904 = vst.msk [vmem:[%s1763_s14] sm:$0xff] %vm493_vm2, %v903_v45 }
 0x8cb   : > { %v836_v46 = vpop.xlane.xlu2 %835  ;;  %v834_v47 = vpop.xlane.xlu0 %833 }
 0x8cc   : > { %v838_v40 = vcvt.f32.s32 %v836_v46  ;;  %v837_v48 = vcvt.f32.s32 %v834_v47 }
 0x8ce   : > { %v839_v43 = vshll.u32 %v838_v40, 16 }
 0x8d0   : > { %v840_v52 = vadd.s32 %v839_v43, %v837_v48 }
 0x8d2   : > { %1098 = vpush %v840_v52 }
 0x903   : > { %s1099_s15 = spop %1098 }
 0x904   : > { %v843_v61 = vstv %s1099_s15 }
 0x905   : > { %v844_v62 = vsel %vm842_vm1, %v843_v61, %v825_v25  ;;  %vm845_vm3 = vcmp.eq.s32.totalorder %v1579_v24, %v843_v61 }
 0x906   : > { %v846_v23 = vsel %vm845_vm3, %v552_v4, 0 }
 0x907   : > { %v847_v42 = vsel %vm493_vm2, %v846_v23, 0 }
 0x908   : > { %v849_v49 = vshrl.u32 %v847_v42, 16  ;;  %v848_v63 = vand.u32 65535, %v847_v42 }
 0x90a   : > { %v851_v0 = vcvt.s32.f32 %v849_v49  ;;  %v850_v1 = vcvt.s32.f32 %v848_v63 }
 0x90c   : > { %854 = vadd.xlane.f32.xlu2 %v851_v0  ;;  %852 = vadd.xlane.f32.xlu0 %v850_v1 }
 0x90d   : > { %1337 = shalt.err (!%p1334_p11)
}
 0x90e   : > { %1116 = dma.vmem_to_hbm [thread:$0]  (%p1529_p3), %s923_s8, 128, %s925_s16, %s906_s18   ;;  %vm861_vm2 = vcmp.eq.s32.totalorder %v1579_v24, 0  ;;  %vm864_vm4 = vcmask 57344  }
 0x90f   : > { %s933_s17 = scalar_lea.hbm %s1832_s6, %s1478_s25  ;;  %s322_s11 = scalar_lea.vmem [#allocation11], %s1556_s10 }
 0x910   : > { %s935_s29 = sshll.u32 %s322_s11, 4  ;;  %s937_s27 = sshll.u32 %s933_s17, 4  ;;  %s936_s29 = int_to_ptr.vmem [resolvable:$true] %s935_s29  ;;  %s938_s27 = int_to_ptr.hbm [resolvable:$true] %s937_s27 }
 0x911   : > { %s911_s8 = scalar_lea.sflag [#allocation12], %s1556_s10  ;;  %s1352_s16 = sshra.s32 %s938_s27, 4  ;;  %s1353_s16 = int_to_ptr.hbm [resolvable:$true] %s1352_s16 }
 0x912   : > { %s1354_s18 = scalar_lea.hbm %s1353_s16, 1  ;;  %s1358_s30 = scalar_lea.hbm %s1832_s6, 2 }
 0x913   : > { %p1355_p12 = scmp.ne.s32.totalorder %s1353_s16, %s1354_s18  ;;  %p1359_p5 = scmp.lt.s32.totalorder %s1353_s16, %s1832_s6 }
 0x914   : > { %p1360_p7 = scmp.lt.s32.totalorder %s1358_s30, %s1354_s18 }
 0x915   : > { %p1356_p13 = pnand %p1355_p12, %p1529_p3 }
 0x916   : > { %p1361_p1 = por %p1360_p7, %p1359_p5 }
 0x917   : > { %p1357_p0 = pneg %p1356_p13 }
 0x919   : > { %p1362_p4 = pnand %p1361_p1, %p1357_p0 }
 0x97f   : > { %v855_v2 = vpop.xlane.xlu2 %854  ;;  %v853_v50 = vpop.xlane.xlu0 %852 }
 0x980   : > { %v857_v3 = vcvt.f32.s32 %v855_v2  ;;  %v856_v6 = vcvt.f32.s32 %v853_v50 }
 0x982   : > { %v858_v5 = vshll.u32 %v857_v3, 16 }
 0x984   : > { %v859_v7 = vadd.s32 %v858_v5, %v856_v6 }
 0x986   : > { %1100 = vpush %v859_v7 }
 0x9b7   : > { %s1101_s19 = spop %1100 }
 0x9b8   : > { %v862_v15 = vstv %s1101_s19 }
 0x9b9   : > { %v863_v22 = vsel %vm861_vm2, %v862_v15, %v844_v62 }
 0x9ba   : > { %865 = vst.msk [vmem:[%s322_s11] sm:$0x1] %vm864_vm4, %v863_v22 }
 0x9bb   : > { %1365 = shalt.err (!%p1362_p4)
}
 0x9bc   : > { %1117 = dma.vmem_to_hbm [thread:$0]  (%p1529_p3), %s936_s29, 16, %s938_s27, %s911_s8  }
 0x9bd PF: > { %s949_s10 = sand.u32 1, %s1404_s21   ;;  %p1840_p8 = scmp.ge.s32.totalorder %s1416_s24, 2 }
 0x9be   : > { %s950_s15 = scalar_lea.sflag [#allocation4], %s949_s10 }
 0x9bf   : > { %p1135_p9 = pnand %p1840_p8, %p1492_p6 }
 0x9c1   : > { %p1136_p10 = pneg %p1135_p9 }
 0x9c3   : > { %1395 = dma.done.wait (%p1136_p10), %s950_s15, 128  }
 0x9c4   : > { %1397 = vsyncadd (%p1136_p10), %s950_s15, 4294967168  ;;  %s960_s14 = scalar_lea.sflag [#allocation12], %s949_s10 }
 0x9c5   : > { %1399 = dma.done.wait (%p1136_p10), %s960_s14, 16  }
 0x9c6   : > { %1401 = vsyncadd (%p1136_p10), %s960_s14, 4294967280  ;;  %p25_p3 = scmp.ge.s32.totalorder %s1516_s26, 4   ;;  %s1841_s21 = smov %s1408_s22 }
 0x9c7   : > { %s1842_s22 = smov %s1412_s23  ;;  %s1843_s23 = smov %s1525_s9 }
 0x9c8   : > { %s1844_s24 = smov %s1516_s26  ;;  %27 = sbr.rel (!%p25_p3) target bundleno = 11 (0xb), region = 114 }
 0x9cd   :  { %965 = vsyncpa [#allocation3], 1 }
 0x9ce   :  { %967 = vsyncpa [#allocation3 + $0x1], 1 }
 0x9cf   :  { %968 = vsyncpa [#allocation6], 1 }
 0x9d0   :  { %969 = vsyncpa [#allocation9], 1 }
 0x9d1   :  { %970 = vsyncpa [#allocation4], 1 }
 0x9d2   :  { %972 = vsyncpa [#allocation4 + $0x1], 1 }
 0x9d3   :  { %973 = vsyncpa [#allocation12], 1 }
 0x9d4   :  { %975 = vsyncpa [#allocation12 + $0x1], 1 }

</bundles_post_ra>
